<compile_context>
chip_gen: v7x
topology: tpu7x:2x2x1
jax: 0.10.0
libtpu: 0.0.40
codegen_flags: <defaults>
</compile_context>

<pallas_src>
import jax
import jax.numpy as jnp
from jax.experimental import pallas as pl
from jax.experimental.pallas import tpu as pltpu


def _round_up(x, m):
    return ((x + m - 1) // m) * m


# ----------------------------------------------------------------------------- kernel
def _make_mlp_kernel(n_layers, transpose_out):
    """refs = (x_ref, w1, b1, ..., wn, bn, out_ref)."""

    def kernel(*refs):
        x_ref = refs[0]
        out_ref = refs[-1]
        param_refs = refs[1:-1]

        h = x_ref[...].astype(jnp.bfloat16)          # bf16 LHS for the MXU
        for l in range(n_layers):
            w = param_refs[2 * l][...]               # bf16 [in_pad, out_pad]
            b = param_refs[2 * l + 1][...]           # f32  [1, out_pad]
            acc = jnp.dot(h, w, preferred_element_type=jnp.float32) + b
            if l < n_layers - 1:
                h = jnp.maximum(acc, 0.0).astype(jnp.bfloat16)   # ReLU, back to bf16
            else:
                h = acc                              # final layer stays f32

        if transpose_out:
            # d_out == 1: transpose [block_batch, 128-padded] -> take the real column as
            # a [1, block_batch] lane-dense row.  Output HBM bytes: B*4 instead of
            # B*128*4.  The transpose runs on the XLU (separate bundle slot).
            h_t = jnp.transpose(h)                   # [d_out_pad, block_batch]
            out_ref[...] = h_t[:1, :][None].astype(out_ref.dtype)   # (1,1,block_batch)
        else:
            out_ref[...] = h.astype(out_ref.dtype)

    return kernel


# ----------------------------------------------------------------------- params / refs
def init_mlp_params(key, dims):
    """Deterministic init matching nn.Linear's U(-1/sqrt(fan_in), 1/sqrt(fan_in))."""
    params = []
    for i in range(len(dims) - 1):
        fan_in, fan_out = dims[i], dims[i + 1]
        key, kw, kb = jax.random.split(key, 3)
        bound = 1.0 / jnp.sqrt(float(fan_in))
        w = jax.random.uniform(kw, (fan_in, fan_out), jnp.float32, -bound, bound)
        b = jax.random.uniform(kb, (1, fan_out), jnp.float32, -bound, bound)
        params.append((w, b))
    return params


def _tpu_vmem_cap_bytes():
    """~80% of physical VMEM for this generation; conservative fallback (v7x 64 MiB)."""
    try:
        phys = int(pltpu.get_tpu_info().vmem_capacity_bytes)
    except Exception:
        phys = 64 << 20
    return max(16 << 20, int(0.8 * phys))


def _is_dual_tensorcore_chip():
    """v7x has 2 TensorCores per chip; v5e/v6e have 1."""
    try:
        return "v7" in jax.devices()[0].device_kind.lower()
    except Exception:
        return False


def _choose_block_batch(B, d_in, out_cols, max_width, param_bytes, vmem_cap, dual_core):
    # Per-row VMEM: triple-buffered x tile + double-buffered out tile + intermediate
    # activations (f32 acc + bf16 copy + slack) at the widest padded layer.
    bytes_per_row = 3 * 4 * d_in + 2 * 4 * out_cols + 10 * max_width
    budget = int(0.6 * vmem_cap) - param_bytes       # params resident once (Buffered(1))
    max_rows = max(8, (budget // max(bytes_per_row, 1)) // 8 * 8)
    if dual_core:
        # v7x: at least 2 batch tiles so CORE_PARALLEL can feed both TensorCores.
        bb = _round_up(pl.cdiv(B, 2), 8)
    else:
        # single-TC v5e/v6e: one grid step for small B avoids pure ~0.35us/step
        # overhead; large B is capped so tiles stay comfortably inside scoped VMEM.
        bb = _round_up(max(B, 1), 8)
    return int(min(bb, 2048, max_rows))


# --------------------------------------------------------------------------- forward
def mlp_forward(x, params, *, squeeze_output=False, block_batch=None):
    """Fused MLP forward via a single pallas_call, tiled over the batch dimension."""
    B, d_in = x.shape
    n_layers = len(params)
    d_out = params[-1][0].shape[1]
    out_dtype = x.dtype

    # --- pad feature dims: hidden + output widths to multiples of 128 (exact) --------
    dims = [d_in] + [w.shape[1] for (w, _) in params]
    pad_dims = [d_in] + [_round_up(d, 128) for d in dims[1:]]
    d_out_pad = pad_dims[-1]
    transpose_out = (d_out == 1)                      # squeeze / scalar-output path

    flat_params = []
    for l, (w, b) in enumerate(params):
        in_p, out_p = pad_dims[l], pad_dims[l + 1]
        if w.shape != (in_p, out_p):
            w = jnp.pad(w, ((0, in_p - w.shape[0]), (0, out_p - w.shape[1])))
        if b.shape[1] != out_p:
            b = jnp.pad(b, ((0, 0), (0, out_p - b.shape[1])))
        flat_params += [w.astype(jnp.bfloat16), b.astype(jnp.float32)]
    param_bytes = sum(p.size * p.dtype.itemsize for p in flat_params)

    # --- batch tiling -----------------------------------------------------------------
    vmem_cap = _tpu_vmem_cap_bytes()
    dual_core = _is_dual_tensorcore_chip()
    if block_batch is None:
        out_cols_budget = 1 if transpose_out else d_out_pad
        block_batch = _choose_block_batch(B, d_in, out_cols_budget, max(pad_dims),
                                          param_bytes, vmem_cap, dual_core)
    grid_len = int(pl.cdiv(B, block_batch))
    B_pad = grid_len * block_batch
    x_p = jnp.pad(x, ((0, B_pad - B), (0, 0))) if B_pad != B else x   # no partial tiles

    # --- cost hint for XLA when this kernel sits inside a larger jit -------------------
    flops = 2 * B_pad * sum(pad_dims[l] * pad_dims[l + 1] for l in range(n_layers))
    out_bytes = (grid_len * block_batch * jnp.dtype(out_dtype).itemsize if transpose_out
                 else B_pad * d_out_pad * jnp.dtype(out_dtype).itemsize)
    cost = pl.CostEstimate(
        flops=int(flops), transcendentals=0,
        bytes_accessed=int(x_p.size * x_p.dtype.itemsize + param_bytes + out_bytes))

    kernel = _make_mlp_kernel(n_layers, transpose_out)

    def _run(use_hints):
        in_specs = []
        x_kwargs = {}
        if use_hints and grid_len >= 4:
            # Long grid, tiny per-step compute -> deepen x prefetch to hide DMA latency.
            x_kwargs = dict(pipeline_mode=pl.Buffered(3))
        in_specs.append(pl.BlockSpec((block_batch, d_in), lambda i: (i, 0), **x_kwargs))
        for p in flat_params:
            # Constant-index blocks: single-buffer them (double-buffering buys nothing
            # and doubles resident-param VMEM).
            p_kwargs = dict(pipeline_mode=pl.Buffered(1)) if use_hints else {}
            in_specs.append(pl.BlockSpec(p.shape, lambda i: (0, 0), **p_kwargs))

        if transpose_out:
            out_shape = jax.ShapeDtypeStruct((grid_len, 1, block_batch), out_dtype)
            out_spec = pl.BlockSpec((1, 1, block_batch), lambda i: (i, 0, 0))
        else:
            out_shape = jax.ShapeDtypeStruct((B_pad, d_out_pad), out_dtype)
            out_spec = pl.BlockSpec((block_batch, d_out_pad), lambda i: (i, 0))

        if use_hints and dual_core:
            dim_sem = (pltpu.CORE_PARALLEL,)          # actually shards grid across 2 TCs
        else:
            dim_sem = ("parallel",)

        fn = pl.pallas_call(
            kernel,
            out_shape=out_shape,
            grid=(grid_len,),
            in_specs=in_specs,
            out_specs=out_spec,
            compiler_params=pltpu.CompilerParams(
                dimension_semantics=dim_sem,
                vmem_limit_bytes=vmem_cap,
            ),
            cost_estimate=cost,
        )
        return jax.block_until_ready(fn(x_p, *flat_params))

    try:
        out = _run(True)
    except Exception:
        # Fallback without Buffered/core-parallel hints (portability across jax versions).
        out = _run(False)

    # --- post-process ------------------------------------------------------------------
    if transpose_out:
        out_flat = out.reshape(B_pad)[:B]
        return out_flat if squeeze_output else out_flat[:, None]
    out = out[:B, :d_out]
    if squeeze_output:
        out = jnp.squeeze(out, axis=-1)
    return out


# ------------------------------------------------------------------------- references
def mlp_reference_f32(x, params, *, squeeze_output=False):
    """Plain-JAX f32 reference matching the PyTorch forward semantics."""
    h = x
    n = len(params)
    for l, (w, b) in enumerate(params):
        h = h @ w + b
        if l < n - 1:
            h = jnp.maximum(h, 0.0)
    if squeeze_output:
        h = jnp.squeeze(h, axis=-1)
    return h


def mlp_reference_bf16(x, params, *, squeeze_output=False):
    """Reference mirroring kernel numerics: bf16 matmul inputs, f32 accumulation."""
    h = x.astype(jnp.bfloat16)
    n = len(params)
    for l, (w, b) in enumerate(params):
        acc = jnp.dot(h, w.astype(jnp.bfloat16), preferred_element_type=jnp.float32) + b
        if l < n - 1:
            h = jnp.maximum(acc, 0.0).astype(jnp.bfloat16)
        else:
            h = acc
    if squeeze_output:
        h = jnp.squeeze(h, axis=-1)
    return h


if __name__ == "__main__":
    # MLP(dims=[32, 64, 64, 1], activation_fn=nn.ReLU, squeeze_output=True)
    dims = [32, 64, 64, 1]
    batch = 256
    squeeze_output = True

    key = jax.random.PRNGKey(0)
    key, kx = jax.random.split(key)
    x = jax.random.normal(kx, (batch, dims[0]), jnp.float32)
    params = init_mlp_params(key, dims)

    out = mlp_forward(x, params, squeeze_output=squeeze_output)
    out = jax.block_until_ready(out)

    ref16 = mlp_reference_bf16(x, params, squeeze_output=squeeze_output)
    ref32 = mlp_reference_f32(x, params, squeeze_output=squeeze_output)
    assert out.shape == (batch,), out.shape
    assert jnp.allclose(out, ref16, atol=2e-3, rtol=2e-3), \
        float(jnp.max(jnp.abs(out - ref16)))
    assert jnp.allclose(out, ref32, atol=5e-2, rtol=5e-2), \
        float(jnp.max(jnp.abs(out - ref32)))

    # TODO(synk): nn.Dropout (train-mode random masking) not implemented; forward is eval-mode.
    print("KERNEL_OK")
</pallas_src>

<mosaic_0001>
module attributes {stable_mosaic.version = 11 : i64} {
  func.func @kernel(%arg0: i32, %arg1: memref<256x32xf32, #tpu.memory_space<vmem>>, %arg2: memref<32x128xbf16, #tpu.memory_space<vmem>>, %arg3: memref<1x128xf32, #tpu.memory_space<vmem>>, %arg4: memref<128x128xbf16, #tpu.memory_space<vmem>>, %arg5: memref<1x128xf32, #tpu.memory_space<vmem>>, %arg6: memref<128x128xbf16, #tpu.memory_space<vmem>>, %arg7: memref<1x128xf32, #tpu.memory_space<vmem>>, %arg8: memref<1x1x256xf32, #tpu.memory_space<vmem>>) attributes {dimension_semantics = [#tpu.dimension_semantics<parallel>], iteration_bounds = array<i64: 1>, scalar_prefetch = 0 : i64, scratch_operands = 0 : i64, tpu.core_type = #tpu.core_type<tc>, window_params = [{transform_indices = @transform_0, window_bounds = array<i64: 256, 32>}, {pipeline_mode = #tpu.pipeline_mode<synchronous>, transform_indices = @transform_1, window_bounds = array<i64: 32, 128>}, {pipeline_mode = #tpu.pipeline_mode<synchronous>, transform_indices = @transform_2, window_bounds = array<i64: 1, 128>}, {pipeline_mode = #tpu.pipeline_mode<synchronous>, transform_indices = @transform_3, window_bounds = array<i64: 128, 128>}, {pipeline_mode = #tpu.pipeline_mode<synchronous>, transform_indices = @transform_4, window_bounds = array<i64: 1, 128>}, {pipeline_mode = #tpu.pipeline_mode<synchronous>, transform_indices = @transform_5, window_bounds = array<i64: 128, 128>}, {pipeline_mode = #tpu.pipeline_mode<synchronous>, transform_indices = @transform_6, window_bounds = array<i64: 1, 128>}, {transform_indices = @transform_7, window_bounds = array<i64: 1, 1, 256>}]} {
    %c0 = arith.constant 0 : index
    %c0_0 = arith.constant 0 : index
    %0 = vector.load %arg1[%c0, %c0_0] : memref<256x32xf32, #tpu.memory_space<vmem>>, vector<256x32xf32>
    %1 = arith.truncf %0 : vector<256x32xf32> to vector<256x32xbf16>
    %c0_1 = arith.constant 0 : index
    %c0_2 = arith.constant 0 : index
    %2 = vector.load %arg2[%c0_1, %c0_2] : memref<32x128xbf16, #tpu.memory_space<vmem>>, vector<32x128xbf16>
    %c0_3 = arith.constant 0 : index
    %c0_4 = arith.constant 0 : index
    %3 = vector.load %arg3[%c0_3, %c0_4] : memref<1x128xf32, #tpu.memory_space<vmem>>, vector<1x128xf32>
    %cst = arith.constant dense<0.000000e+00> : vector<256x128xf32>
    %4 = tpu.matmul %1, %2, %cst {dimension_numbers = #tpu.dot_dimension_numbers<[1], [0], [0], [1], [0, 0, 1, 1], [], []>} : vector<256x32xbf16>, vector<32x128xbf16>, vector<256x128xf32> -> vector<256x128xf32>
    %5 = vector.broadcast %3 : vector<1x128xf32> to vector<256x128xf32>
    %6 = arith.addf %4, %5 : vector<256x128xf32>
    %cst_5 = arith.constant 0.000000e+00 : f32
    %7 = vector.broadcast %cst_5 : f32 to vector<256x128xf32>
    %8 = arith.maximumf %6, %7 : vector<256x128xf32>
    %9 = arith.truncf %8 : vector<256x128xf32> to vector<256x128xbf16>
    %c0_6 = arith.constant 0 : index
    %c0_7 = arith.constant 0 : index
    %10 = vector.load %arg4[%c0_6, %c0_7] : memref<128x128xbf16, #tpu.memory_space<vmem>>, vector<128x128xbf16>
    %c0_8 = arith.constant 0 : index
    %c0_9 = arith.constant 0 : index
    %11 = vector.load %arg5[%c0_8, %c0_9] : memref<1x128xf32, #tpu.memory_space<vmem>>, vector<1x128xf32>
    %cst_10 = arith.constant dense<0.000000e+00> : vector<256x128xf32>
    %12 = tpu.matmul %9, %10, %cst_10 {dimension_numbers = #tpu.dot_dimension_numbers<[1], [0], [0], [1], [0, 0, 1, 1], [], []>} : vector<256x128xbf16>, vector<128x128xbf16>, vector<256x128xf32> -> vector<256x128xf32>
    %13 = vector.broadcast %11 : vector<1x128xf32> to vector<256x128xf32>
    %14 = arith.addf %12, %13 : vector<256x128xf32>
    %cst_11 = arith.constant 0.000000e+00 : f32
    %15 = vector.broadcast %cst_11 : f32 to vector<256x128xf32>
    %16 = arith.maximumf %14, %15 : vector<256x128xf32>
    %17 = arith.truncf %16 : vector<256x128xf32> to vector<256x128xbf16>
    %c0_12 = arith.constant 0 : index
    %c0_13 = arith.constant 0 : index
    %18 = vector.load %arg6[%c0_12, %c0_13] : memref<128x128xbf16, #tpu.memory_space<vmem>>, vector<128x128xbf16>
    %c0_14 = arith.constant 0 : index
    %c0_15 = arith.constant 0 : index
    %19 = vector.load %arg7[%c0_14, %c0_15] : memref<1x128xf32, #tpu.memory_space<vmem>>, vector<1x128xf32>
    %cst_16 = arith.constant dense<0.000000e+00> : vector<256x128xf32>
    %20 = tpu.matmul %17, %18, %cst_16 {dimension_numbers = #tpu.dot_dimension_numbers<[1], [0], [0], [1], [0, 0, 1, 1], [], []>} : vector<256x128xbf16>, vector<128x128xbf16>, vector<256x128xf32> -> vector<256x128xf32>
    %21 = vector.broadcast %19 : vector<1x128xf32> to vector<256x128xf32>
    %22 = arith.addf %20, %21 : vector<256x128xf32>
    %23 = tpu.transpose %22, [1, 0] : vector<256x128xf32> -> vector<128x256xf32>
    %24 = vector.extract_strided_slice %23 {offsets = [0, 0], sizes = [1, 256], strides = [1, 1]} : vector<128x256xf32> to vector<1x256xf32>
    %25 = vector.shape_cast %24 : vector<1x256xf32> to vector<1x1x256xf32>
    %c0_17 = arith.constant 0 : index
    %c0_18 = arith.constant 0 : index
    %c0_19 = arith.constant 0 : index
    %26 = vector.load %arg8[%c0_17, %c0_18, %c0_19] : memref<1x1x256xf32, #tpu.memory_space<vmem>>, vector<1x1x256xf32>
    tpu.vector_store %arg8[%c0_17, %c0_18, %c0_19], %25 {strides = array<i32>} : memref<1x1x256xf32, #tpu.memory_space<vmem>>, vector<1x1x256xf32>,
    return
  }
  func.func @transform_0(%arg0: i32) -> (i32, i32) {
    %c0_i32 = arith.constant 0 : i32
    %c0_i32_0 = arith.constant 0 : i32
    return %arg0, %c0_i32 : i32, i32
  }
  func.func @transform_1(%arg0: i32) -> (i32, i32) {
    %c0_i32 = arith.constant 0 : i32
    %c0_i32_0 = arith.constant 0 : i32
    %c0_i32_1 = arith.constant 0 : i32
    return %c0_i32, %c0_i32_0 : i32, i32
  }
  func.func @transform_2(%arg0: i32) -> (i32, i32) {
    %c0_i32 = arith.constant 0 : i32
    %c0_i32_0 = arith.constant 0 : i32
    %c0_i32_1 = arith.constant 0 : i32
    return %c0_i32, %c0_i32_0 : i32, i32
  }
  func.func @transform_3(%arg0: i32) -> (i32, i32) {
    %c0_i32 = arith.constant 0 : i32
    %c0_i32_0 = arith.constant 0 : i32
    %c0_i32_1 = arith.constant 0 : i32
    return %c0_i32, %c0_i32_0 : i32, i32
  }
  func.func @transform_4(%arg0: i32) -> (i32, i32) {
    %c0_i32 = arith.constant 0 : i32
    %c0_i32_0 = arith.constant 0 : i32
    %c0_i32_1 = arith.constant 0 : i32
    return %c0_i32, %c0_i32_0 : i32, i32
  }
  func.func @transform_5(%arg0: i32) -> (i32, i32) {
    %c0_i32 = arith.constant 0 : i32
    %c0_i32_0 = arith.constant 0 : i32
    %c0_i32_1 = arith.constant 0 : i32
    return %c0_i32, %c0_i32_0 : i32, i32
  }
  func.func @transform_6(%arg0: i32) -> (i32, i32) {
    %c0_i32 = arith.constant 0 : i32
    %c0_i32_0 = arith.constant 0 : i32
    %c0_i32_1 = arith.constant 0 : i32
    return %c0_i32, %c0_i32_0 : i32, i32
  }
  func.func @transform_7(%arg0: i32) -> (i32, i32, i32) {
    %c0_i32 = arith.constant 0 : i32
    %c0_i32_0 = arith.constant 0 : i32
    %c0_i32_1 = arith.constant 0 : i32
    return %arg0, %c0_i32, %c0_i32_0 : i32, i32, i32
  }
}

module attributes {stable_mosaic.version = 11 : i64} {
  func.func @kernel(%arg0: i32, %arg1: memref<256x32xf32, #tpu.memory_space<vmem>>, %arg2: memref<32x128xbf16, #tpu.memory_space<vmem>>, %arg3: memref<1x128xf32, #tpu.memory_space<vmem>>, %arg4: memref<128x128xbf16, #tpu.memory_space<vmem>>, %arg5: memref<1x128xf32, #tpu.memory_space<vmem>>, %arg6: memref<128x128xbf16, #tpu.memory_space<vmem>>, %arg7: memref<1x128xf32, #tpu.memory_space<vmem>>, %arg8: memref<1x1x256xf32, #tpu.memory_space<vmem>>) attributes {dimension_semantics = [#tpu.dimension_semantics<parallel>], iteration_bounds = array<i64: 1>, scalar_prefetch = 0 : i64, scratch_operands = 0 : i64, tpu.core_type = #tpu.core_type<tc>, window_params = [{transform_indices = @transform_0, window_bounds = array<i64: 256, 32>}, {pipeline_mode = #tpu.pipeline_mode<synchronous>, transform_indices = @transform_1, window_bounds = array<i64: 32, 128>}, {pipeline_mode = #tpu.pipeline_mode<synchronous>, transform_indices = @transform_2, window_bounds = array<i64: 1, 128>}, {pipeline_mode = #tpu.pipeline_mode<synchronous>, transform_indices = @transform_3, window_bounds = array<i64: 128, 128>}, {pipeline_mode = #tpu.pipeline_mode<synchronous>, transform_indices = @transform_4, window_bounds = array<i64: 1, 128>}, {pipeline_mode = #tpu.pipeline_mode<synchronous>, transform_indices = @transform_5, window_bounds = array<i64: 128, 128>}, {pipeline_mode = #tpu.pipeline_mode<synchronous>, transform_indices = @transform_6, window_bounds = array<i64: 1, 128>}, {transform_indices = @transform_7, window_bounds = array<i64: 1, 1, 256>}]} {
    %c0 = arith.constant 0 : index
    %c0_0 = arith.constant 0 : index
    %0 = vector.load %arg1[%c0, %c0_0] : memref<256x32xf32, #tpu.memory_space<vmem>>, vector<256x32xf32>
    %1 = arith.truncf %0 : vector<256x32xf32> to vector<256x32xbf16>
    %c0_1 = arith.constant 0 : index
    %c0_2 = arith.constant 0 : index
    %2 = vector.load %arg2[%c0_1, %c0_2] : memref<32x128xbf16, #tpu.memory_space<vmem>>, vector<32x128xbf16>
    %c0_3 = arith.constant 0 : index
    %c0_4 = arith.constant 0 : index
    %3 = vector.load %arg3[%c0_3, %c0_4] : memref<1x128xf32, #tpu.memory_space<vmem>>, vector<1x128xf32>
    %cst = arith.constant dense<0.000000e+00> : vector<256x128xf32>
    %4 = tpu.matmul %1, %2, %cst {dimension_numbers = #tpu.dot_dimension_numbers<[1], [0], [0], [1], [0, 0, 1, 1], [], []>} : vector<256x32xbf16>, vector<32x128xbf16>, vector<256x128xf32> -> vector<256x128xf32>
    %5 = vector.broadcast %3 : vector<1x128xf32> to vector<256x128xf32>
    %6 = arith.addf %4, %5 : vector<256x128xf32>
    %cst_5 = arith.constant 0.000000e+00 : f32
    %7 = vector.broadcast %cst_5 : f32 to vector<256x128xf32>
    %8 = arith.maximumf %6, %7 : vector<256x128xf32>
    %9 = arith.truncf %8 : vector<256x128xf32> to vector<256x128xbf16>
    %c0_6 = arith.constant 0 : index
    %c0_7 = arith.constant 0 : index
    %10 = vector.load %arg4[%c0_6, %c0_7] : memref<128x128xbf16, #tpu.memory_space<vmem>>, vector<128x128xbf16>
    %c0_8 = arith.constant 0 : index
    %c0_9 = arith.constant 0 : index
    %11 = vector.load %arg5[%c0_8, %c0_9] : memref<1x128xf32, #tpu.memory_space<vmem>>, vector<1x128xf32>
    %cst_10 = arith.constant dense<0.000000e+00> : vector<256x128xf32>
    %12 = tpu.matmul %9, %10, %cst_10 {dimension_numbers = #tpu.dot_dimension_numbers<[1], [0], [0], [1], [0, 0, 1, 1], [], []>} : vector<256x128xbf16>, vector<128x128xbf16>, vector<256x128xf32> -> vector<256x128xf32>
    %13 = vector.broadcast %11 : vector<1x128xf32> to vector<256x128xf32>
    %14 = arith.addf %12, %13 : vector<256x128xf32>
    %cst_11 = arith.constant 0.000000e+00 : f32
    %15 = vector.broadcast %cst_11 : f32 to vector<256x128xf32>
    %16 = arith.maximumf %14, %15 : vector<256x128xf32>
    %17 = arith.truncf %16 : vector<256x128xf32> to vector<256x128xbf16>
    %c0_12 = arith.constant 0 : index
    %c0_13 = arith.constant 0 : index
    %18 = vector.load %arg6[%c0_12, %c0_13] : memref<128x128xbf16, #tpu.memory_space<vmem>>, vector<128x128xbf16>
    %c0_14 = arith.constant 0 : index
    %c0_15 = arith.constant 0 : index
    %19 = vector.load %arg7[%c0_14, %c0_15] : memref<1x128xf32, #tpu.memory_space<vmem>>, vector<1x128xf32>
    %cst_16 = arith.constant dense<0.000000e+00> : vector<256x128xf32>
    %20 = tpu.matmul %17, %18, %cst_16 {dimension_numbers = #tpu.dot_dimension_numbers<[1], [0], [0], [1], [0, 0, 1, 1], [], []>} : vector<256x128xbf16>, vector<128x128xbf16>, vector<256x128xf32> -> vector<256x128xf32>
    %21 = vector.broadcast %19 : vector<1x128xf32> to vector<256x128xf32>
    %22 = arith.addf %20, %21 : vector<256x128xf32>
    %23 = tpu.transpose %22, [1, 0] : vector<256x128xf32> -> vector<128x256xf32>
    %24 = vector.extract_strided_slice %23 {offsets = [0, 0], sizes = [1, 256], strides = [1, 1]} : vector<128x256xf32> to vector<1x256xf32>
    %25 = vector.shape_cast %24 : vector<1x256xf32> to vector<1x1x256xf32>
    %c0_17 = arith.constant 0 : index
    %c0_18 = arith.constant 0 : index
    %c0_19 = arith.constant 0 : index
    %26 = vector.load %arg8[%c0_17, %c0_18, %c0_19] : memref<1x1x256xf32, #tpu.memory_space<vmem>>, vector<1x1x256xf32>
    tpu.vector_store %arg8[%c0_17, %c0_18, %c0_19], %25 {strides = array<i32>} : memref<1x1x256xf32, #tpu.memory_space<vmem>>, vector<1x1x256xf32>,
    return
  }
  func.func @transform_0(%arg0: i32) -> (i32, i32) {
    %c0_i32 = arith.constant 0 : i32
    %c0_i32_0 = arith.constant 0 : i32
    return %arg0, %c0_i32 : i32, i32
  }
  func.func @transform_1(%arg0: i32) -> (i32, i32) {
    %c0_i32 = arith.constant 0 : i32
    %c0_i32_0 = arith.constant 0 : i32
    %c0_i32_1 = arith.constant 0 : i32
    return %c0_i32, %c0_i32_0 : i32, i32
  }
  func.func @transform_2(%arg0: i32) -> (i32, i32) {
    %c0_i32 = arith.constant 0 : i32
    %c0_i32_0 = arith.constant 0 : i32
    %c0_i32_1 = arith.constant 0 : i32
    return %c0_i32, %c0_i32_0 : i32, i32
  }
  func.func @transform_3(%arg0: i32) -> (i32, i32) {
    %c0_i32 = arith.constant 0 : i32
    %c0_i32_0 = arith.constant 0 : i32
    %c0_i32_1 = arith.constant 0 : i32
    return %c0_i32, %c0_i32_0 : i32, i32
  }
  func.func @transform_4(%arg0: i32) -> (i32, i32) {
    %c0_i32 = arith.constant 0 : i32
    %c0_i32_0 = arith.constant 0 : i32
    %c0_i32_1 = arith.constant 0 : i32
    return %c0_i32, %c0_i32_0 : i32, i32
  }
  func.func @transform_5(%arg0: i32) -> (i32, i32) {
    %c0_i32 = arith.constant 0 : i32
    %c0_i32_0 = arith.constant 0 : i32
    %c0_i32_1 = arith.constant 0 : i32
    return %c0_i32, %c0_i32_0 : i32, i32
  }
  func.func @transform_6(%arg0: i32) -> (i32, i32) {
    %c0_i32 = arith.constant 0 : i32
    %c0_i32_0 = arith.constant 0 : i32
    %c0_i32_1 = arith.constant 0 : i32
    return %c0_i32, %c0_i32_0 : i32, i32
  }
  func.func @transform_7(%arg0: i32) -> (i32, i32, i32) {
    %c0_i32 = arith.constant 0 : i32
    %c0_i32_0 = arith.constant 0 : i32
    %c0_i32_1 = arith.constant 0 : i32
    return %arg0, %c0_i32, %c0_i32_0 : i32, i32, i32
  }
}

</mosaic_0001>

<bundles_post_ra>
// kernel: tpu_custom_call.1
= control target key start
LH: loop header
LB: loop body
LE: loop exit
PB: predicated region body
PF: predicated region fallthrough
CT: control target
= control target key end

     0   :  { %vm99_vm0 = vcmask 261120   ;;  %s1593_s0 = inlined_call_operand.vmem [shape: f32[256,32], index: 0, kind: input, shape index: {}]   ;;  %s1594_s1 = inlined_call_operand.vmem [shape: bf16[32,128], index: 1, kind: input, shape index: {}]   ;;  %s1595_s2 = inlined_call_operand.vmem [shape: f32[1,128], index: 2, kind: input, shape index: {}]   ;;  %s1596_s3 = inlined_call_operand.vmem [shape: bf16[128,128], index: 3, kind: input, shape index: {}]   ;;  %s1597_s4 = inlined_call_operand.vmem [shape: f32[1,128], index: 4, kind: input, shape index: {}]   ;;  %s1598_s5 = inlined_call_operand.vmem [shape: bf16[128,128], index: 5, kind: input, shape index: {}]   ;;  %s1599_s6 = inlined_call_operand.vmem [shape: f32[1,128], index: 6, kind: input, shape index: {}]   ;;  %s1600_s7 = inlined_call_operand.hbm [shape: f32[1,1,256], index: 7, kind: output, shape index: {}]  }
   0x1   :  { %v1211_v0 = vld [vmem:[%s1594_s1] sm:$0xff]   ;;  %v1212_v1 = vld [vmem:[%s1594_s1 + $0x8] sm:$0xff]   ;;  %v30_v5 = vld [vmem:[%s1593_s0 + $0x10] sm:$0xff] }
   0x2   :  { %1073 = vmatprep.subr.bf16.mxu0 %v1211_v0  ;;  %v28_v2 = vld [vmem:[%s1593_s0] sm:$0xff]  ;;  %v29_v3 = vld [vmem:[%s1593_s0 + $0x8] sm:$0xff]  ;;  %1205 = vmatprep.subr.bf16.mxu1 %v1211_v0  ;;  %v31_v6 = vld [vmem:[%s1593_s0 + $0x18] sm:$0xff] }
   0x3   :  { %1074 = vmatpush3.bf16.msra.mxu0 %v1211_v0  ;;  %v60_v4 = vpack.c.bf16 %v29_v3, %v28_v2  ;;  %1207 = vmatpush3.bf16.msra.mxu1 %v1211_v0  ;;  %v32_v7 = vld [vmem:[%s1593_s0 + $0x20] sm:$0xff]  ;;  %v33_v8 = vld [vmem:[%s1593_s0 + $0x28] sm:$0xff]  ;;  %v61_v9 = vpack.c.bf16 %v31_v6, %v30_v5  ;;  %v46_v14 = vld [vmem:[%s1593_s0 + $0x90] sm:$0xff] }
   0x4   :  { %1075 = vmatprep.subr.bf16.mxu0 %v1212_v1  ;;  %1206 = vmatprep.subr.bf16.mxu1 %v1212_v1  ;;  %v62_v10 = vpack.c.bf16 %v33_v8, %v32_v7  ;;  %v44_v11 = vld [vmem:[%s1593_s0 + $0x80] sm:$0xff]  ;;  %v45_v12 = vld [vmem:[%s1593_s0 + $0x88] sm:$0xff]  ;;  %v47_v15 = vld [vmem:[%s1593_s0 + $0x98] sm:$0xff] }
   0x5   :  { %1077 = vmatprep.mubr.msk.bf16.mxu0 %vm99_vm0, %v60_v4  ;;  %v68_v13 = vpack.c.bf16 %v45_v12, %v44_v11  ;;  %v48_v16 = vld [vmem:[%s1593_s0 + $0xa0] sm:$0xff]  ;;  %v69_v17 = vpack.c.bf16 %v47_v15, %v46_v14  ;;  %v49_v18 = vld [vmem:[%s1593_s0 + $0xa8] sm:$0xff]  ;;  %v34_v19 = vld [vmem:[%s1593_s0 + $0x30] sm:$0xff] }
   0x6   :  { %v35_v20 = vld [vmem:[%s1593_s0 + $0x38] sm:$0xff]  ;;  %v36_v21 = vld [vmem:[%s1593_s0 + $0x40] sm:$0xff]  ;;  %v70_v22 = vpack.c.bf16 %v49_v18, %v48_v16  ;;  %v37_v23 = vld [vmem:[%s1593_s0 + $0x48] sm:$0xff] }
   0x7   :  { %1076 = vmatpush3.bf16.msra.mxu0 %v1212_v1  ;;  %1208 = vmatpush3.bf16.msra.mxu1 %v1212_v1  ;;  %v50_v24 = vld [vmem:[%s1593_s0 + $0xb0] sm:$0xff]  ;;  %v51_v25 = vld [vmem:[%s1593_s0 + $0xb8] sm:$0xff]  ;;  %v52_v26 = vld [vmem:[%s1593_s0 + $0xc0] sm:$0xff]  ;;  %v63_v29 = vpack.c.bf16 %v35_v20, %v34_v19  ;;  %v64_v31 = vpack.c.bf16 %v37_v23, %v36_v21 }
   0x8   :  { %1093 = vmatprep.mubr.msk.bf16.mxu1 %vm99_vm0, %v68_v13  ;;  %v53_v27 = vld [vmem:[%s1593_s0 + $0xc8] sm:$0xff]  ;;  %v1213_v28 = vld [vmem:[%s1596_s3] sm:$0xff]   ;;  %v71_v32 = vpack.c.bf16 %v51_v25, %v50_v24  ;;  %v38_v34 = vld [vmem:[%s1593_s0 + $0x50] sm:$0xff] }
   0x9   :  { %v1214_v30 = vld [vmem:[%s1596_s3 + $0x8] sm:$0xff]   ;;  %1109 = vmatprep.subr.bf16.mxu1 %v1213_v28  ;;  %v72_v33 = vpack.c.bf16 %v53_v27, %v52_v26  ;;  %v39_v35 = vld [vmem:[%s1593_s0 + $0x58] sm:$0xff]  ;;  %v1215_v36 = vld [vmem:[%s1596_s3 + $0x10] sm:$0xff]  }
   0xa   :  { %1078 = vmatmul.mubr.msk.bf16.vlgmr.msra.gmra.mrb[0].mxu0 %vm99_vm0, %v61_v9  ;;  %1094 = vmatmul.mubr.msk.bf16.vlgmr.msra.gmra.mrb[0].mxu1 %vm99_vm0, %v69_v17  ;;  %v40_v37 = vld [vmem:[%s1593_s0 + $0x60] sm:$0xff]  ;;  %v41_v38 = vld [vmem:[%s1593_s0 + $0x68] sm:$0xff]  ;;  %v54_v39 = vld [vmem:[%s1593_s0 + $0xd0] sm:$0xff]  ;;  %v65_v44 = vpack.c.bf16 %v39_v35, %v38_v34 }
   0xb   :  { %1081 = vmatprep.mubr.msk.bf16.mxu0 %vm99_vm0, %v62_v10  ;;  %1097 = vmatprep.mubr.msk.bf16.mxu1 %vm99_vm0, %v70_v22  ;;  %v55_v40 = vld [vmem:[%s1593_s0 + $0xd8] sm:$0xff]  ;;  %v56_v41 = vld [vmem:[%s1593_s0 + $0xe0] sm:$0xff]  ;;  %v57_v42 = vld [vmem:[%s1593_s0 + $0xe8] sm:$0xff]  ;;  %v66_v45 = vpack.c.bf16 %v41_v38, %v40_v37 }
   0xc   :  { %1110 = vmatpush3.bf16.msra.mxu1 %v1213_v28  ;;  %v1216_v43 = vld [vmem:[%s1596_s3 + $0x18] sm:$0xff]   ;;  %v73_v46 = vpack.c.bf16 %v55_v40, %v54_v39  ;;  %v74_v47 = vpack.c.bf16 %v57_v42, %v56_v41  ;;  %v1217_v48 = vld [vmem:[%s1596_s3 + $0x20] sm:$0xff]  }
   0xd   :  { %1111 = vmatprep.subr.bf16.mxu1 %v1214_v30 }
  0x10   :  { %1112 = vmatpush3.bf16.msra.mxu1 %v1214_v30 }
  0x11   :  { %1113 = vmatprep.subr.bf16.mxu1 %v1215_v36 }
  0x12   :  { %1082 = vmatmul.mubr.msk.bf16.gmra.mrb[4].mxu0 %vm99_vm0, %v63_v29  ;;  %1098 = vmatmul.mubr.msk.bf16.gmra.mrb[4].mxu1 %vm99_vm0, %v71_v32 }
  0x13   :  { %1085 = vmatprep.mubr.msk.bf16.mxu0 %vm99_vm0, %v64_v31  ;;  %1101 = vmatprep.mubr.msk.bf16.mxu1 %vm99_vm0, %v72_v33 }
  0x14   :  { %1114 = vmatpush3.bf16.msra.mxu1 %v1215_v36 }
  0x15   :  { %1115 = vmatprep.subr.bf16.mxu1 %v1216_v43 }
  0x16   :  { %12 = vsyncpa [#allocation3], 0  ;;  %v42_v49 = vld [vmem:[%s1593_s0 + $0x70] sm:$0xff]  ;;  %v43_v50 = vld [vmem:[%s1593_s0 + $0x78] sm:$0xff] }
  0x17   :  { %v58_v51 = vld [vmem:[%s1593_s0 + $0xf0] sm:$0xff]  ;;  %v59_v52 = vld [vmem:[%s1593_s0 + $0xf8] sm:$0xff]  ;;  %v1218_v53 = vld [vmem:[%s1596_s3 + $0x28] sm:$0xff]   ;;  %v67_v54 = vpack.c.bf16 %v43_v50, %v42_v49 }
  0x18   :  { %1116 = vmatpush3.bf16.msra.mxu1 %v1216_v43  ;;  %v75_v55 = vpack.c.bf16 %v59_v52, %v58_v51  ;;  %v1219_v56 = vld [vmem:[%s1596_s3 + $0x30] sm:$0xff]   ;;  %v1220_v57 = vld [vmem:[%s1596_s3 + $0x38] sm:$0xff]   ;;  %v1221_v58 = vld [vmem:[%s1598_s5] sm:$0xff]  }
  0x19   :  { %1117 = vmatprep.subr.bf16.mxu1 %v1217_v48  ;;  %v1222_v59 = vld [vmem:[%s1598_s5 + $0x8] sm:$0xff]   ;;  %1157 = vmatprep.subr.bf16.mxu0 %v1221_v58  ;;  %v1223_v60 = vld [vmem:[%s1598_s5 + $0x10] sm:$0xff]   ;;  %v1224_v61 = vld [vmem:[%s1598_s5 + $0x18] sm:$0xff]  }
  0x1a   :  { %1086 = vmatmul.mubr.msk.bf16.gmra.mrb[8].mxu0 %vm99_vm0, %v65_v44  ;;  %1102 = vmatmul.mubr.msk.bf16.gmra.mrb[8].mxu1 %vm99_vm0, %v73_v46  ;;  %v1225_v62 = vld [vmem:[%s1598_s5 + $0x20] sm:$0xff]   ;;  %v1226_v63 = vld [vmem:[%s1598_s5 + $0x28] sm:$0xff]  }
  0x1b   :  { %1089 = vmatprep.mubr.msk.bf16.mxu0 %vm99_vm0, %v66_v45  ;;  %1105 = vmatprep.mubr.msk.bf16.mxu1 %vm99_vm0, %v74_v47  ;;  %v1458_v0 = vld [vmem:[%s1595_s2] ss:$0 sm:$0xff] }
  0x1c   :  { %1118 = vmatpush3.bf16.msra.mxu1 %v1217_v48  ;;  %1158 = vmatpush3.bf16.msra.mxu0 %v1221_v58 }
  0x1d   :  { %1119 = vmatprep.subr.bf16.mxu1 %v1218_v53  ;;  %1159 = vmatprep.subr.bf16.mxu0 %v1222_v59 }
  0x20   :  { %1120 = vmatpush3.bf16.msra.mxu1 %v1218_v53  ;;  %1160 = vmatpush3.bf16.msra.mxu0 %v1222_v59 }
  0x21   :  { %1121 = vmatprep.subr.bf16.mxu1 %v1219_v56  ;;  %1161 = vmatprep.subr.bf16.mxu0 %v1223_v60 }
  0x22   :  { %1090 = vmatmul.mubr.msk.bf16.gmra.mrb[12].mxu0 %vm99_vm0, %v67_v54  ;;  %1106 = vmatmul.mubr.msk.bf16.gmra.mrb[12].mxu1 %vm99_vm0, %v75_v55 }
  0x24   :  { %1122 = vmatpush3.bf16.msra.mxu1 %v1219_v56  ;;  %1162 = vmatpush3.bf16.msra.mxu0 %v1223_v60 }
  0x25   :  { %1123 = vmatprep.subr.bf16.mxu1 %v1220_v57  ;;  %1163 = vmatprep.subr.bf16.mxu0 %v1224_v61 }
  0x28   :  { %1124 = vmatpush3.bf16.msra.mxu1 %v1220_v57  ;;  %1164 = vmatpush3.bf16.msra.mxu0 %v1224_v61 }
  0x29   :  { %1165 = vmatprep.subr.bf16.mxu0 %v1225_v62 }
  0x2c   :  { %1166 = vmatpush3.bf16.msra.mxu0 %v1225_v62 }
  0x2d   :  { %1167 = vmatprep.subr.bf16.mxu0 %v1226_v63 }
  0x30   :  { %1168 = vmatpush3.bf16.msra.mxu0 %v1226_v63 }
  0xdd   :  { %v1079_v1 = vpop.f32.mrb[0].mxu0  ;;  %v1095_v4 = vpop.f32.mrb[0].mxu1 }
  0xde   :  { %v191_v2 = vadd.f32 %v1079_v1, %v1458_v0  ;;  %v182_v3 = vpop.f32.mrb[1].mxu0  ;;  %v255_v7 = vadd.f32 %v1095_v4, %v1458_v0  ;;  %v246_v8 = vpop.f32.mrb[1].mxu1 }
  0xdf   :  { %v183_v5 = vadd.f32 %v1458_v0, %v182_v3  ;;  %v1080_v6 = vpop.f32.mrb[2].mxu0  ;;  %v247_v11 = vadd.f32 %v1458_v0, %v246_v8  ;;  %v1096_v12 = vpop.f32.mrb[2].mxu1 }
  0xe0   :  { %v194_v9 = vadd.f32 %v1080_v6, %v1458_v0  ;;  %v185_v10 = vpop.f32.mrb[3].mxu0  ;;  %v327_v14 = vmax.f32 %v255_v7, 0.0  ;;  %v258_v15 = vadd.f32 %v1096_v12, %v1458_v0  ;;  %v249_v16 = vpop.f32.mrb[3].mxu1  ;;  %v311_v17 = vmax.f32 %v191_v2, 0.0 }
  0xe1   :  { %v186_v13 = vadd.f32 %v1458_v0, %v185_v10  ;;  %v325_v19 = vmax.f32 %v247_v11, 0.0  ;;  %v250_v20 = vadd.f32 %v1458_v0, %v249_v16  ;;  %v309_v21 = vmax.f32 %v183_v5, 0.0 }
  0xe2   :  { %v312_v18 = vmax.f32 %v194_v9, 0.0  ;;  %v328_v23 = vmax.f32 %v258_v15, 0.0 }
  0xe3   :  { %v310_v22 = vmax.f32 %v186_v13, 0.0  ;;  %v326_v25 = vmax.f32 %v250_v20, 0.0 }
  0xe4   :  { %v342_v24 = vpack.c.bf16 %v312_v18, %v311_v17  ;;  %v1468_v28 = vpack.c.bf16 %v328_v23, %v327_v14 }
  0xe5   :  { %v341_v26 = vpack.c.bf16 %v310_v22, %v309_v21  ;;  %v1083_v27 = vpop.f32.mrb[4].mxu0  ;;  %v1471_v31 = vpack.c.bf16 %v326_v25, %v325_v19  ;;  %v1099_v32 = vpop.f32.mrb[4].mxu1 }
  0xe6   :  { %v207_v29 = vadd.f32 %v1083_v27, %v1458_v0  ;;  %v198_v30 = vpop.f32.mrb[5].mxu0  ;;  %v271_v35 = vadd.f32 %v1099_v32, %v1458_v0  ;;  %v262_v36 = vpop.f32.mrb[5].mxu1 }
  0xe7   :  { %v199_v33 = vadd.f32 %v1458_v0, %v198_v30  ;;  %v1084_v34 = vpop.f32.mrb[6].mxu0  ;;  %1125 = vmatprep.mubr.bf16.mxu1 %v341_v26  ;;  %v263_v39 = vadd.f32 %v1458_v0, %v262_v36  ;;  %v1100_v40 = vpop.f32.mrb[6].mxu1 }
  0xe8   :  { %v210_v37 = vadd.f32 %v1084_v34, %v1458_v0  ;;  %v201_v38 = vpop.f32.mrb[7].mxu0  ;;  %1126 = vmatmul.mubr.bf16.vlgmr.msra.gmra.mrb[16].mxu1 %v342_v24  ;;  %v331_v42 = vmax.f32 %v271_v35, 0.0  ;;  %v274_v43 = vadd.f32 %v1100_v40, %v1458_v0  ;;  %v265_v44 = vpop.f32.mrb[7].mxu1  ;;  %v315_v45 = vmax.f32 %v207_v29, 0.0 }
  0xe9   :  { %v202_v41 = vadd.f32 %v1458_v0, %v201_v38  ;;  %v329_v47 = vmax.f32 %v263_v39, 0.0  ;;  %v266_v48 = vadd.f32 %v1458_v0, %v265_v44  ;;  %v313_v49 = vmax.f32 %v199_v33, 0.0 }
  0xea   :  { %v316_v46 = vmax.f32 %v210_v37, 0.0  ;;  %v332_v51 = vmax.f32 %v274_v43, 0.0 }
  0xeb   :  { %v314_v50 = vmax.f32 %v202_v41, 0.0  ;;  %v330_v53 = vmax.f32 %v266_v48, 0.0 }
  0xec   :  { %v344_v52 = vpack.c.bf16 %v316_v46, %v315_v45  ;;  %v1480_v56 = vpack.c.bf16 %v332_v51, %v331_v42 }
  0xed   :  { %v343_v54 = vpack.c.bf16 %v314_v50, %v313_v49  ;;  %v1087_v55 = vpop.f32.mrb[8].mxu0  ;;  %v351_v59 = vpack.c.bf16 %v330_v53, %v329_v47  ;;  %v1103_v60 = vpop.f32.mrb[8].mxu1 }
  0xee   :  { %v223_v57 = vadd.f32 %v1087_v55, %v1458_v0  ;;  %v214_v58 = vpop.f32.mrb[9].mxu0  ;;  %v287_v63 = vadd.f32 %v1103_v60, %v1458_v0  ;;  %v278_v1 = vpop.f32.mrb[9].mxu1 }
  0xef   :  { %v215_v61 = vadd.f32 %v1458_v0, %v214_v58  ;;  %v1088_v62 = vpop.f32.mrb[10].mxu0  ;;  %1129 = vmatprep.mubr.bf16.mxu1 %v343_v54  ;;  %v279_v4 = vadd.f32 %v1458_v0, %v278_v1  ;;  %v1104_v5 = vpop.f32.mrb[10].mxu1 }
  0xf0   :  { %v226_v2 = vadd.f32 %v1088_v62, %v1458_v0  ;;  %v217_v3 = vpop.f32.mrb[11].mxu0  ;;  %1130 = vmatmul.mubr.bf16.gmra.mrb[20].mxu1 %v344_v52  ;;  %v335_v7 = vmax.f32 %v287_v63, 0.0  ;;  %v290_v8 = vadd.f32 %v1104_v5, %v1458_v0  ;;  %v281_v9 = vpop.f32.mrb[11].mxu1  ;;  %v319_v10 = vmax.f32 %v223_v57, 0.0  ;;  %v1228_v52 = vld [vmem:[%s1598_s5 + $0x38] sm:$0xff]  }
  0xf1   :  { %v218_v6 = vadd.f32 %v1458_v0, %v217_v3  ;;  %v333_v12 = vmax.f32 %v279_v4, 0.0  ;;  %v282_v13 = vadd.f32 %v1458_v0, %v281_v9  ;;  %v317_v14 = vmax.f32 %v215_v61, 0.0 }
  0xf2   :  { %v320_v11 = vmax.f32 %v226_v2, 0.0  ;;  %v336_v16 = vmax.f32 %v290_v8, 0.0 }
  0xf3   :  { %v318_v15 = vmax.f32 %v218_v6, 0.0  ;;  %v334_v18 = vmax.f32 %v282_v13, 0.0 }
  0xf4   :  { %v346_v17 = vpack.c.bf16 %v320_v11, %v319_v10  ;;  %v354_v21 = vpack.c.bf16 %v336_v16, %v335_v7 }
  0xf5   :  { %v345_v19 = vpack.c.bf16 %v318_v15, %v317_v14  ;;  %v1091_v20 = vpop.f32.mrb[12].mxu0  ;;  %v353_v24 = vpack.c.bf16 %v334_v18, %v333_v12  ;;  %v1107_v25 = vpop.f32.mrb[12].mxu1 }
  0xf6   :  { %v239_v22 = vadd.f32 %v1091_v20, %v1458_v0  ;;  %v230_v23 = vpop.f32.mrb[13].mxu0  ;;  %v303_v29 = vadd.f32 %v1107_v25, %v1458_v0  ;;  %v294_v30 = vpop.f32.mrb[13].mxu1 }
  0xf7   :  { %v231_v26 = vadd.f32 %v1458_v0, %v230_v23  ;;  %v1092_v27 = vpop.f32.mrb[14].mxu0  ;;  %1133 = vmatprep.mubr.bf16.mxu1 %v345_v19  ;;  %v295_v34 = vadd.f32 %v1458_v0, %v294_v30  ;;  %v1108_v35 = vpop.f32.mrb[14].mxu1 }
  0xf8   :  { %v242_v32 = vadd.f32 %v1092_v27, %v1458_v0  ;;  %v233_v33 = vpop.f32.mrb[15].mxu0  ;;  %1134 = vmatmul.mubr.bf16.gmra.mrb[24].mxu1 %v346_v17  ;;  %v339_v37 = vmax.f32 %v303_v29, 0.0  ;;  %v306_v38 = vadd.f32 %v1108_v35, %v1458_v0  ;;  %v297_v39 = vpop.f32.mrb[15].mxu1  ;;  %v323_v40 = vmax.f32 %v239_v22, 0.0 }
  0xf9   :  { %v234_v36 = vadd.f32 %v1458_v0, %v233_v33  ;;  %v337_v42 = vmax.f32 %v295_v34, 0.0  ;;  %v298_v43 = vadd.f32 %v1458_v0, %v297_v39  ;;  %v321_v44 = vmax.f32 %v231_v26, 0.0  ;;  %v1227_v0 = vld [vmem:[%s1598_s5 + $0x30] sm:$0xff]  }
  0xfa   :  { %v324_v41 = vmax.f32 %v242_v32, 0.0  ;;  %v340_v46 = vmax.f32 %v306_v38, 0.0  ;;  %1169 = vmatprep.subr.bf16.mxu0 %v1227_v0 }
  0xfb   :  { %v322_v45 = vmax.f32 %v234_v36, 0.0  ;;  %v338_v48 = vmax.f32 %v298_v43, 0.0  ;;  %1170 = vmatpush3.bf16.msra.mxu0 %v1227_v0 }
  0xfc   :  { %v348_v47 = vpack.c.bf16 %v324_v41, %v323_v40  ;;  %v356_v50 = vpack.c.bf16 %v340_v46, %v339_v37  ;;  %1171 = vmatprep.subr.bf16.mxu0 %v1228_v52 }
  0xfd   :  { %v347_v49 = vpack.c.bf16 %v322_v45, %v321_v44  ;;  %v355_v51 = vpack.c.bf16 %v338_v48, %v337_v42 }
  0xff   :  { %1137 = vmatprep.mubr.bf16.mxu1 %v347_v49  ;;  %1172 = vmatpush3.bf16.msra.mxu0 %v1228_v52 }
 0x100   :  { %1138 = vmatmul.mubr.bf16.gmra.mrb[28].mxu1 %v348_v47 }
 0x101   :  { %1141 = vmatprep.mubr.bf16.mxu1 %v1471_v31 }
 0x108   :  { %1142 = vmatmul.mubr.bf16.gmra.mrb[32].mxu1 %v1468_v28  ;;  %v1510_v28 = vld [vmem:[%s1597_s4] ss:$0 sm:$0xff] }
 0x109   :  { %1145 = vmatprep.mubr.bf16.mxu1 %v351_v59 }
 0x110   :  { %1146 = vmatmul.mubr.bf16.gmra.mrb[36].mxu1 %v1480_v56 }
 0x111   :  { %1149 = vmatprep.mubr.bf16.mxu1 %v353_v24 }
 0x118   :  { %1150 = vmatmul.mubr.bf16.gmra.mrb[40].mxu1 %v354_v21 }
 0x119   :  { %1153 = vmatprep.mubr.bf16.mxu1 %v355_v51 }
 0x120   :  { %1154 = vmatmul.mubr.bf16.gmra.mrb[44].mxu1 %v356_v50 }
 0x1bb   :  { %v1127_v31 = vpop.f32.mrb[16].mxu1 }
 0x1bc   :  { %v471_v53 = vadd.f32 %v1127_v31, %v1510_v28  ;;  %v462_v54 = vpop.f32.mrb[17].mxu1 }
 0x1bd   :  { %v463_v55 = vadd.f32 %v1510_v28, %v462_v54  ;;  %v1128_v56 = vpop.f32.mrb[18].mxu1 }
 0x1be   :  { %v474_v57 = vadd.f32 %v1128_v56, %v1510_v28  ;;  %v465_v58 = vpop.f32.mrb[19].mxu1  ;;  %v591_v60 = vmax.f32 %v471_v53, 0.0 }
 0x1bf   :  { %v466_v59 = vadd.f32 %v1510_v28, %v465_v58  ;;  %v589_v62 = vmax.f32 %v463_v55, 0.0 }
 0x1c0   :  { %v592_v61 = vmax.f32 %v474_v57, 0.0 }
 0x1c1   :  { %v590_v63 = vmax.f32 %v466_v59, 0.0 }
 0x1c2   :  { %v622_v1 = vpack.c.bf16 %v592_v61, %v591_v60 }
 0x1c3   :  { %v621_v2 = vpack.c.bf16 %v590_v63, %v589_v62  ;;  %v1131_v3 = vpop.f32.mrb[20].mxu1 }
 0x1c4   :  { %v487_v4 = vadd.f32 %v1131_v3, %v1510_v28  ;;  %v478_v5 = vpop.f32.mrb[21].mxu1 }
 0x1c5   :  { %v479_v6 = vadd.f32 %v1510_v28, %v478_v5  ;;  %v1132_v7 = vpop.f32.mrb[22].mxu1  ;;  %1173 = vmatprep.mubr.bf16.mxu0 %v621_v2 }
 0x1c6   :  { %v490_v8 = vadd.f32 %v1132_v7, %v1510_v28  ;;  %v481_v9 = vpop.f32.mrb[23].mxu1  ;;  %1174 = vmatmul.mubr.bf16.vlgmr.msra.gmra.mrb[16].mxu0 %v622_v1  ;;  %v595_v11 = vmax.f32 %v487_v4, 0.0 }
 0x1c7   :  { %v482_v10 = vadd.f32 %v1510_v28, %v481_v9  ;;  %v593_v13 = vmax.f32 %v479_v6, 0.0 }
 0x1c8   :  { %v596_v12 = vmax.f32 %v490_v8, 0.0 }
 0x1c9   :  { %v594_v14 = vmax.f32 %v482_v10, 0.0 }
 0x1ca   :  { %v624_v15 = vpack.c.bf16 %v596_v12, %v595_v11 }
 0x1cb   :  { %v623_v16 = vpack.c.bf16 %v594_v14, %v593_v13  ;;  %v1135_v17 = vpop.f32.mrb[24].mxu1 }
 0x1cc   :  { %v503_v18 = vadd.f32 %v1135_v17, %v1510_v28  ;;  %v494_v19 = vpop.f32.mrb[25].mxu1 }
 0x1cd   :  { %v495_v20 = vadd.f32 %v1510_v28, %v494_v19  ;;  %v1136_v21 = vpop.f32.mrb[26].mxu1  ;;  %1177 = vmatprep.mubr.bf16.mxu0 %v623_v16 }
 0x1ce   :  { %v506_v22 = vadd.f32 %v1136_v21, %v1510_v28  ;;  %v497_v23 = vpop.f32.mrb[27].mxu1  ;;  %1178 = vmatmul.mubr.bf16.gmra.mrb[20].mxu0 %v624_v15  ;;  %v599_v25 = vmax.f32 %v503_v18, 0.0 }
 0x1cf   :  { %v498_v24 = vadd.f32 %v1510_v28, %v497_v23  ;;  %v597_v27 = vmax.f32 %v495_v20, 0.0 }
 0x1d0   :  { %v600_v26 = vmax.f32 %v506_v22, 0.0 }
 0x1d1   :  { %v598_v29 = vmax.f32 %v498_v24, 0.0 }
 0x1d2   :  { %v626_v30 = vpack.c.bf16 %v600_v26, %v599_v25 }
 0x1d3   :  { %v625_v32 = vpack.c.bf16 %v598_v29, %v597_v27  ;;  %v1139_v33 = vpop.f32.mrb[28].mxu1 }
 0x1d4   :  { %v519_v34 = vadd.f32 %v1139_v33, %v1510_v28  ;;  %v510_v35 = vpop.f32.mrb[29].mxu1 }
 0x1d5   :  { %v511_v36 = vadd.f32 %v1510_v28, %v510_v35  ;;  %v1140_v37 = vpop.f32.mrb[30].mxu1  ;;  %1181 = vmatprep.mubr.bf16.mxu0 %v625_v32 }
 0x1d6   :  { %v522_v38 = vadd.f32 %v1140_v37, %v1510_v28  ;;  %v513_v39 = vpop.f32.mrb[31].mxu1  ;;  %1182 = vmatmul.mubr.bf16.gmra.mrb[24].mxu0 %v626_v30  ;;  %v603_v41 = vmax.f32 %v519_v34, 0.0 }
 0x1d7   :  { %v514_v40 = vadd.f32 %v1510_v28, %v513_v39  ;;  %v601_v43 = vmax.f32 %v511_v36, 0.0 }
 0x1d8   :  { %v604_v42 = vmax.f32 %v522_v38, 0.0 }
 0x1d9   :  { %v602_v44 = vmax.f32 %v514_v40, 0.0  ;;  %v1547_v40 = vld [vmem:[%s1599_s6] ss:$0 sm:$0xff]  ;;  %s1254_s6 = smov [#allocation2]  }
 0x1da   :  { %v628_v45 = vpack.c.bf16 %v604_v42, %v603_v41  ;;  %s962_s29 = sshll.u32 %s1254_s6, 4  ;;  %s963_s29 = int_to_ptr.vmem [resolvable:$true] %s962_s29 }
 0x1db   :  { %v627_v46 = vpack.c.bf16 %v602_v44, %v601_v43  ;;  %v1143_v47 = vpop.f32.mrb[32].mxu1  ;;  %s1229_s30 = scalar_lea.vmem %s963_s29, 32  ;;  %p1234_p1 = scmp.lt.s32.totalorder %s963_s29, %s963_s29 }
 0x1dc   :  { %v535_v48 = vadd.f32 %v1143_v47, %v1510_v28  ;;  %v526_v49 = vpop.f32.mrb[33].mxu1  ;;  %p1230_p0 = scmp.ne.s32.totalorder %s963_s29, %s1229_s30  ;;  %p1235_p2 = scmp.lt.s32.totalorder %s1229_s30, %s1229_s30 }
 0x1dd   :  { %v527_v50 = vadd.f32 %v1510_v28, %v526_v49  ;;  %v1144_v51 = vpop.f32.mrb[34].mxu1  ;;  %1185 = vmatprep.mubr.bf16.mxu0 %v627_v46 }
 0x1de   :  { %v538_v0 = vadd.f32 %v1144_v51, %v1510_v28  ;;  %v529_v52 = vpop.f32.mrb[35].mxu1  ;;  %1186 = vmatmul.mubr.bf16.gmra.mrb[28].mxu0 %v628_v45  ;;  %v607_v53 = vmax.f32 %v535_v48, 0.0  ;;  %p1236_p3 = por %p1235_p2, %p1234_p1 }
 0x1df   :  { %v530_v31 = vadd.f32 %v1510_v28, %v529_v52  ;;  %v605_v55 = vmax.f32 %v527_v50, 0.0 }
 0x1e0   :  { %v608_v54 = vmax.f32 %v538_v0, 0.0  ;;  %p1237_p4 = pnand %p1236_p3, %p1230_p0 }
 0x1e1   :  { %v606_v56 = vmax.f32 %v530_v31, 0.0 }
 0x1e2   :  { %v630_v57 = vpack.c.bf16 %v608_v54, %v607_v53 }
 0x1e3   :  { %v629_v58 = vpack.c.bf16 %v606_v56, %v605_v55  ;;  %v1147_v59 = vpop.f32.mrb[36].mxu1 }
 0x1e4   :  { %v551_v60 = vadd.f32 %v1147_v59, %v1510_v28  ;;  %v542_v61 = vpop.f32.mrb[37].mxu1 }
 0x1e5   :  { %v543_v62 = vadd.f32 %v1510_v28, %v542_v61  ;;  %v1148_v63 = vpop.f32.mrb[38].mxu1  ;;  %1189 = vmatprep.mubr.bf16.mxu0 %v629_v58 }
 0x1e6   :  { %v611_v1 = vmax.f32 %v551_v60, 0.0  ;;  %v554_v2 = vadd.f32 %v1148_v63, %v1510_v28  ;;  %v545_v3 = vpop.f32.mrb[39].mxu1  ;;  %1190 = vmatmul.mubr.bf16.gmra.mrb[32].mxu0 %v630_v57 }
 0x1e7   :  { %v609_v4 = vmax.f32 %v543_v62, 0.0  ;;  %v546_v5 = vadd.f32 %v1510_v28, %v545_v3 }
 0x1e8   :  { %v612_v6 = vmax.f32 %v554_v2, 0.0 }
 0x1e9   :  { %v610_v7 = vmax.f32 %v546_v5, 0.0 }
 0x1ea   :  { %v632_v8 = vpack.c.bf16 %v612_v6, %v611_v1 }
 0x1eb   :  { %v631_v9 = vpack.c.bf16 %v610_v7, %v609_v4  ;;  %v1151_v10 = vpop.f32.mrb[40].mxu1 }
 0x1ec   :  { %v567_v11 = vadd.f32 %v1151_v10, %v1510_v28  ;;  %v558_v12 = vpop.f32.mrb[41].mxu1 }
 0x1ed   :  { %1193 = vmatprep.mubr.bf16.mxu0 %v631_v9  ;;  %v559_v13 = vadd.f32 %v1510_v28, %v558_v12  ;;  %v1152_v14 = vpop.f32.mrb[42].mxu1 }
 0x1ee   :  { %1194 = vmatmul.mubr.bf16.gmra.mrb[36].mxu0 %v632_v8  ;;  %v615_v15 = vmax.f32 %v567_v11, 0.0  ;;  %v570_v16 = vadd.f32 %v1152_v14, %v1510_v28  ;;  %v561_v17 = vpop.f32.mrb[43].mxu1 }
 0x1ef   :  { %v613_v18 = vmax.f32 %v559_v13, 0.0  ;;  %v562_v19 = vadd.f32 %v1510_v28, %v561_v17 }
 0x1f0   :  { %v616_v20 = vmax.f32 %v570_v16, 0.0 }
 0x1f1   :  { %v614_v21 = vmax.f32 %v562_v19, 0.0 }
 0x1f2   :  { %v634_v22 = vpack.c.bf16 %v616_v20, %v615_v15 }
 0x1f3   :  { %v633_v23 = vpack.c.bf16 %v614_v21, %v613_v18  ;;  %v1155_v24 = vpop.f32.mrb[44].mxu1 }
 0x1f4   :  { %v583_v25 = vadd.f32 %v1155_v24, %v1510_v28  ;;  %v574_v26 = vpop.f32.mrb[45].mxu1 }
 0x1f5   :  { %1197 = vmatprep.mubr.bf16.mxu0 %v633_v23  ;;  %v575_v27 = vadd.f32 %v1510_v28, %v574_v26  ;;  %v1156_v29 = vpop.f32.mrb[46].mxu1 }
 0x1f6   :  { %1198 = vmatmul.mubr.bf16.gmra.mrb[40].mxu0 %v634_v22  ;;  %v619_v30 = vmax.f32 %v583_v25, 0.0  ;;  %v586_v32 = vadd.f32 %v1156_v29, %v1510_v28  ;;  %v577_v33 = vpop.f32.mrb[47].mxu1 }
 0x1f7   :  { %v617_v34 = vmax.f32 %v575_v27, 0.0  ;;  %v578_v35 = vadd.f32 %v1510_v28, %v577_v33 }
 0x1f8   :  { %v620_v36 = vmax.f32 %v586_v32, 0.0 }
 0x1f9   :  { %v618_v37 = vmax.f32 %v578_v35, 0.0 }
 0x1fa   :  { %v636_v38 = vpack.c.bf16 %v620_v36, %v619_v30 }
 0x1fb   :  { %v635_v39 = vpack.c.bf16 %v618_v37, %v617_v34 }
 0x1fd   :  { %1201 = vmatprep.mubr.bf16.mxu0 %v635_v39 }
 0x1fe   :  { %1202 = vmatmul.mubr.bf16.gmra.mrb[44].mxu0 %v636_v38 }
 0x299   :  { %v1175_v41 = vpop.f32.mrb[16].mxu0 }
 0x29a   :  { %v742_v42 = vpop.f32.mrb[17].mxu0  ;;  %v751_v48 = vadd.f32 %v1175_v41, %v1547_v40 }
 0x29b   :  { %v1176_v43 = vpop.f32.mrb[18].mxu0  ;;  %v743_v44 = vadd.f32 %v1547_v40, %v742_v42  ;;  %v1253_v42 = vmov 1966171168  }
 0x29c   :  { %v745_v45 = vpop.f32.mrb[19].mxu0  ;;  %v754_v51 = vadd.f32 %v1176_v43, %v1547_v40  ;;  %v937_v43 = vunpack.c.l.s4 %v1253_v42 }
 0x29d   :  { %869 = vxpose.xlu0.b32.start [1/16] (narrow) %v743_v44, 8  ;;  %v746_v28 = vadd.f32 %v1547_v40, %v745_v45  ;;  %v939_v44 = vlaneseq }
 0x29e   :  { %v938_v45 = vunpack.c.0.s8 %v937_v43 }
 0x29f   :  { %vm953_vm1 = vcmp.lt.s32.totalorder %v939_v44, 256 }
 0x2a1   :  { %v1179_v46 = vpop.f32.mrb[20].mxu0  ;;  %870 = vxpose.xlu0.b32.cont [2/16] (narrow) %v746_v28, 8  ;;  %v940_v28 = vshrl.u32 %v939_v44, 7 }
 0x2a2   :  { %v758_v47 = vpop.f32.mrb[21].mxu0  ;;  %v767_v58 = vadd.f32 %v1179_v46, %v1547_v40 }
 0x2a3   :  { %v1180_v49 = vpop.f32.mrb[22].mxu0  ;;  %v759_v31 = vadd.f32 %v1547_v40, %v758_v47  ;;  %v941_v47 = vsub.s32 %v938_v45, %v940_v28 }
 0x2a4   :  { %v761_v50 = vpop.f32.mrb[23].mxu0  ;;  %v770_v61 = vadd.f32 %v1180_v49, %v1547_v40 }
 0x2a5   :  { %871 = vxpose.xlu0.b32.cont [3/16] (narrow) %v751_v48, 8  ;;  %v762_v55 = vadd.f32 %v1547_v40, %v761_v50 }
 0x2a9   :  { %v1183_v0 = vpop.f32.mrb[24].mxu0  ;;  %872 = vxpose.xlu0.b32.cont [4/16] (narrow) %v754_v51, 8 }
 0x2aa   :  { %v774_v52 = vpop.f32.mrb[25].mxu0  ;;  %v783_v9 = vadd.f32 %v1183_v0, %v1547_v40 }
 0x2ab   :  { %v1184_v53 = vpop.f32.mrb[26].mxu0  ;;  %v775_v1 = vadd.f32 %v1547_v40, %v774_v52 }
 0x2ac   :  { %v777_v54 = vpop.f32.mrb[27].mxu0  ;;  %v786_v13 = vadd.f32 %v1184_v53, %v1547_v40 }
 0x2ad   :  { %873 = vxpose.xlu0.b32.cont [5/16] (narrow) %v759_v31, 8  ;;  %v778_v5 = vadd.f32 %v1547_v40, %v777_v54 }
 0x2b1   :  { %v1187_v56 = vpop.f32.mrb[28].mxu0  ;;  %874 = vxpose.xlu0.b32.cont [6/16] (narrow) %v762_v55, 8 }
 0x2b2   :  { %v790_v57 = vpop.f32.mrb[29].mxu0  ;;  %v799_v32 = vadd.f32 %v1187_v56, %v1547_v40 }
 0x2b3   :  { %v1188_v59 = vpop.f32.mrb[30].mxu0  ;;  %v791_v18 = vadd.f32 %v1547_v40, %v790_v57 }
 0x2b4   :  { %v793_v60 = vpop.f32.mrb[31].mxu0  ;;  %v802_v39 = vadd.f32 %v1188_v59, %v1547_v40 }
 0x2b5   :  { %875 = vxpose.xlu0.b32.cont [7/16] (narrow) %v767_v58, 8  ;;  %v794_v25 = vadd.f32 %v1547_v40, %v793_v60 }
 0x2b9   :  { %v1191_v62 = vpop.f32.mrb[32].mxu0  ;;  %876 = vxpose.xlu0.b32.cont [8/16] (narrow) %v770_v61, 8 }
 0x2ba   :  { %v806_v63 = vpop.f32.mrb[33].mxu0  ;;  %v815_v10 = vadd.f32 %v1191_v62, %v1547_v40 }
 0x2bb   :  { %v1192_v2 = vpop.f32.mrb[34].mxu0  ;;  %v807_v3 = vadd.f32 %v1547_v40, %v806_v63 }
 0x2bc   :  { %v809_v4 = vpop.f32.mrb[35].mxu0  ;;  %v818_v14 = vadd.f32 %v1192_v2, %v1547_v40 }
 0x2bd   :  { %901 = vxpose.xlu1.b32.start [1/16] (narrow) %v807_v3, 8  ;;  %877 = vxpose.xlu0.b32.cont [9/16] (narrow) %v775_v1, 8  ;;  %v810_v6 = vadd.f32 %v1547_v40, %v809_v4 }
 0x2c1   :  { %v1195_v7 = vpop.f32.mrb[36].mxu0  ;;  %902 = vxpose.xlu1.b32.cont [2/16] (narrow) %v810_v6, 8  ;;  %878 = vxpose.xlu0.b32.cont [10/16] (narrow) %v778_v5, 8 }
 0x2c2   :  { %v822_v8 = vpop.f32.mrb[37].mxu0  ;;  %v831_v33 = vadd.f32 %v1195_v7, %v1547_v40 }
 0x2c3   :  { %v1196_v11 = vpop.f32.mrb[38].mxu0  ;;  %v823_v19 = vadd.f32 %v1547_v40, %v822_v8 }
 0x2c4   :  { %v825_v12 = vpop.f32.mrb[39].mxu0  ;;  %v834_v41 = vadd.f32 %v1196_v11, %v1547_v40 }
 0x2c5   :  { %903 = vxpose.xlu1.b32.cont [3/16] (narrow) %v815_v10, 8  ;;  %879 = vxpose.xlu0.b32.cont [11/16] (narrow) %v783_v9, 8  ;;  %v826_v26 = vadd.f32 %v1547_v40, %v825_v12 }
 0x2c9   :  { %904 = vxpose.xlu1.b32.cont [4/16] (narrow) %v818_v14, 8  ;;  %880 = vxpose.xlu0.b32.cont [12/16] (narrow) %v786_v13, 8  ;;  %v1199_v15 = vpop.f32.mrb[40].mxu0 }
 0x2ca   :  { %v847_v16 = vadd.f32 %v1199_v15, %v1547_v40  ;;  %v838_v17 = vpop.f32.mrb[41].mxu0 }
 0x2cb   :  { %v839_v20 = vadd.f32 %v1547_v40, %v838_v17  ;;  %v1200_v21 = vpop.f32.mrb[42].mxu0 }
 0x2cc   :  { %v850_v22 = vadd.f32 %v1200_v21, %v1547_v40  ;;  %v841_v23 = vpop.f32.mrb[43].mxu0 }
 0x2cd   :  { %905 = vxpose.xlu1.b32.cont [5/16] (narrow) %v823_v19, 8  ;;  %881 = vxpose.xlu0.b32.cont [13/16] (narrow) %v791_v18, 8  ;;  %v842_v24 = vadd.f32 %v1547_v40, %v841_v23 }
 0x2d1   :  { %906 = vxpose.xlu1.b32.cont [6/16] (narrow) %v826_v26, 8  ;;  %882 = vxpose.xlu0.b32.cont [14/16] (narrow) %v794_v25, 8  ;;  %v1203_v27 = vpop.f32.mrb[44].mxu0 }
 0x2d2   :  { %v863_v29 = vadd.f32 %v1203_v27, %v1547_v40  ;;  %v854_v30 = vpop.f32.mrb[45].mxu0 }
 0x2d3   :  { %v855_v34 = vadd.f32 %v1547_v40, %v854_v30  ;;  %v1204_v35 = vpop.f32.mrb[46].mxu0 }
 0x2d4   :  { %v866_v36 = vadd.f32 %v1204_v35, %v1547_v40  ;;  %v857_v37 = vpop.f32.mrb[47].mxu0 }
 0x2d5   :  { %907 = vxpose.xlu1.b32.cont [7/16] (narrow) %v831_v33, 8  ;;  %883 = vxpose.xlu0.b32.cont [15/16] (narrow) %v799_v32, 8  ;;  %v858_v38 = vadd.f32 %v1547_v40, %v857_v37 }
 0x2d9   :  { %908 = vxpose.xlu1.b32.cont [8/16] (narrow) %v834_v41, 8  ;;  %884 = vxpose.xlu0.b32.end [16/16] (narrow) %v802_v39, 8 }
 0x2dd   :  { %909 = vxpose.xlu1.b32.cont [9/16] (narrow) %v839_v20, 8 }
 0x2e1   :  { %910 = vxpose.xlu1.b32.cont [10/16] (narrow) %v842_v24, 8 }
 0x2e5   :  { %911 = vxpose.xlu1.b32.cont [11/16] (narrow) %v847_v16, 8 }
 0x2e9   :  { %912 = vxpose.xlu1.b32.cont [12/16] (narrow) %v850_v22, 8 }
 0x2ed   :  { %913 = vxpose.xlu1.b32.cont [13/16] (narrow) %v855_v34, 8 }
 0x2f1   :  { %914 = vxpose.xlu1.b32.cont [14/16] (narrow) %v858_v38, 8 }
 0x2f5   :  { %915 = vxpose.xlu1.b32.cont [15/16] (narrow) %v863_v29, 8 }
 0x2f9   :  { %916 = vxpose.xlu1.b32.end [16/16] (narrow) %v866_v36, 8 }
 0x31d   :  { %v885_v46 = vpop.trf.xlu0 }
 0x33d   :  { %v917_v48 = vpop.trf.xlu1 }
 0x33e   :  { %v935_v49 = vcombine.low %v885_v46, %v917_v48 }
 0x340   :  { %v942_v40 = vrot.slane %v935_v49, %v941_v47 }
 0x342   :  { %v949_v50 = vrot.slane %v942_v40, %v941_v47 }
 0x344   :  { %955 = vst.msk [vmem:[#allocation2] sm:$0x3] %vm953_vm1, %v949_v50 }
 0x345   :  { %1240 = shalt.err (!%p1237_p4)
}
 0x346   :  { %s1241_s10 = scalar_lea.hbm %s1600_s7, 32 }
 0x347   :  { %p1242_p5 = scmp.ne.s32.totalorder %s1600_s7, %s1241_s10  ;;  %p1245_p6 = scmp.lt.u32.totalorder %s1241_s10, %s1600_s7 }
 0x349   :  { %p1247_p7 = pnand %p1245_p6, %p1242_p5 }
 0x34b   :  { %1250 = shalt.err (!%p1247_p7)
}
 0x34c   :  { %965 = dma.vmem_to_hbm [thread:$0]  %s963_s29, 32, %s1600_s7, [#allocation3]  }
 0x34d   :  { %1251 = dma.done.wait [#allocation3], 32  }
 0x34e   :  { %1252 = vsyncadd [#allocation3], 4294967264 }
 0x34f   :  { %969 = vsyncpa [#allocation3], 1 }

// kernel: tpu_custom_call.1
= control target key start
LH: loop header
LB: loop body
LE: loop exit
PB: predicated region body
PF: predicated region fallthrough
CT: control target
= control target key end

     0   :  { %vm99_vm0 = vcmask 261120   ;;  %s1593_s0 = inlined_call_operand.vmem [shape: f32[256,32], index: 0, kind: input, shape index: {}]   ;;  %s1594_s1 = inlined_call_operand.vmem [shape: bf16[32,128], index: 1, kind: input, shape index: {}]   ;;  %s1595_s2 = inlined_call_operand.vmem [shape: f32[1,128], index: 2, kind: input, shape index: {}]   ;;  %s1596_s3 = inlined_call_operand.vmem [shape: bf16[128,128], index: 3, kind: input, shape index: {}]   ;;  %s1597_s4 = inlined_call_operand.vmem [shape: f32[1,128], index: 4, kind: input, shape index: {}]   ;;  %s1598_s5 = inlined_call_operand.vmem [shape: bf16[128,128], index: 5, kind: input, shape index: {}]   ;;  %s1599_s6 = inlined_call_operand.vmem [shape: f32[1,128], index: 6, kind: input, shape index: {}]   ;;  %s1600_s7 = inlined_call_operand.hbm [shape: f32[1,1,256], index: 7, kind: output, shape index: {}]  }
   0x1   :  { %v1211_v0 = vld [vmem:[%s1594_s1] sm:$0xff]   ;;  %v1212_v1 = vld [vmem:[%s1594_s1 + $0x8] sm:$0xff]   ;;  %v30_v5 = vld [vmem:[%s1593_s0 + $0x10] sm:$0xff] }
   0x2   :  { %1073 = vmatprep.subr.bf16.mxu0 %v1211_v0  ;;  %v28_v2 = vld [vmem:[%s1593_s0] sm:$0xff]  ;;  %v29_v3 = vld [vmem:[%s1593_s0 + $0x8] sm:$0xff]  ;;  %1205 = vmatprep.subr.bf16.mxu1 %v1211_v0  ;;  %v31_v6 = vld [vmem:[%s1593_s0 + $0x18] sm:$0xff] }
   0x3   :  { %1074 = vmatpush3.bf16.msra.mxu0 %v1211_v0  ;;  %v60_v4 = vpack.c.bf16 %v29_v3, %v28_v2  ;;  %1207 = vmatpush3.bf16.msra.mxu1 %v1211_v0  ;;  %v32_v7 = vld [vmem:[%s1593_s0 + $0x20] sm:$0xff]  ;;  %v33_v8 = vld [vmem:[%s1593_s0 + $0x28] sm:$0xff]  ;;  %v61_v9 = vpack.c.bf16 %v31_v6, %v30_v5  ;;  %v46_v14 = vld [vmem:[%s1593_s0 + $0x90] sm:$0xff] }
   0x4   :  { %1075 = vmatprep.subr.bf16.mxu0 %v1212_v1  ;;  %1206 = vmatprep.subr.bf16.mxu1 %v1212_v1  ;;  %v62_v10 = vpack.c.bf16 %v33_v8, %v32_v7  ;;  %v44_v11 = vld [vmem:[%s1593_s0 + $0x80] sm:$0xff]  ;;  %v45_v12 = vld [vmem:[%s1593_s0 + $0x88] sm:$0xff]  ;;  %v47_v15 = vld [vmem:[%s1593_s0 + $0x98] sm:$0xff] }
   0x5   :  { %1077 = vmatprep.mubr.msk.bf16.mxu0 %vm99_vm0, %v60_v4  ;;  %v68_v13 = vpack.c.bf16 %v45_v12, %v44_v11  ;;  %v48_v16 = vld [vmem:[%s1593_s0 + $0xa0] sm:$0xff]  ;;  %v69_v17 = vpack.c.bf16 %v47_v15, %v46_v14  ;;  %v49_v18 = vld [vmem:[%s1593_s0 + $0xa8] sm:$0xff]  ;;  %v34_v19 = vld [vmem:[%s1593_s0 + $0x30] sm:$0xff] }
   0x6   :  { %v35_v20 = vld [vmem:[%s1593_s0 + $0x38] sm:$0xff]  ;;  %v36_v21 = vld [vmem:[%s1593_s0 + $0x40] sm:$0xff]  ;;  %v70_v22 = vpack.c.bf16 %v49_v18, %v48_v16  ;;  %v37_v23 = vld [vmem:[%s1593_s0 + $0x48] sm:$0xff] }
   0x7   :  { %1076 = vmatpush3.bf16.msra.mxu0 %v1212_v1  ;;  %1208 = vmatpush3.bf16.msra.mxu1 %v1212_v1  ;;  %v50_v24 = vld [vmem:[%s1593_s0 + $0xb0] sm:$0xff]  ;;  %v51_v25 = vld [vmem:[%s1593_s0 + $0xb8] sm:$0xff]  ;;  %v52_v26 = vld [vmem:[%s1593_s0 + $0xc0] sm:$0xff]  ;;  %v63_v29 = vpack.c.bf16 %v35_v20, %v34_v19  ;;  %v64_v31 = vpack.c.bf16 %v37_v23, %v36_v21 }
   0x8   :  { %1093 = vmatprep.mubr.msk.bf16.mxu1 %vm99_vm0, %v68_v13  ;;  %v53_v27 = vld [vmem:[%s1593_s0 + $0xc8] sm:$0xff]  ;;  %v1213_v28 = vld [vmem:[%s1596_s3] sm:$0xff]   ;;  %v71_v32 = vpack.c.bf16 %v51_v25, %v50_v24  ;;  %v38_v34 = vld [vmem:[%s1593_s0 + $0x50] sm:$0xff] }
   0x9   :  { %v1214_v30 = vld [vmem:[%s1596_s3 + $0x8] sm:$0xff]   ;;  %1109 = vmatprep.subr.bf16.mxu1 %v1213_v28  ;;  %v72_v33 = vpack.c.bf16 %v53_v27, %v52_v26  ;;  %v39_v35 = vld [vmem:[%s1593_s0 + $0x58] sm:$0xff]  ;;  %v1215_v36 = vld [vmem:[%s1596_s3 + $0x10] sm:$0xff]  }
   0xa   :  { %1078 = vmatmul.mubr.msk.bf16.vlgmr.msra.gmra.mrb[0].mxu0 %vm99_vm0, %v61_v9  ;;  %1094 = vmatmul.mubr.msk.bf16.vlgmr.msra.gmra.mrb[0].mxu1 %vm99_vm0, %v69_v17  ;;  %v40_v37 = vld [vmem:[%s1593_s0 + $0x60] sm:$0xff]  ;;  %v41_v38 = vld [vmem:[%s1593_s0 + $0x68] sm:$0xff]  ;;  %v54_v39 = vld [vmem:[%s1593_s0 + $0xd0] sm:$0xff]  ;;  %v65_v44 = vpack.c.bf16 %v39_v35, %v38_v34 }
   0xb   :  { %1081 = vmatprep.mubr.msk.bf16.mxu0 %vm99_vm0, %v62_v10  ;;  %1097 = vmatprep.mubr.msk.bf16.mxu1 %vm99_vm0, %v70_v22  ;;  %v55_v40 = vld [vmem:[%s1593_s0 + $0xd8] sm:$0xff]  ;;  %v56_v41 = vld [vmem:[%s1593_s0 + $0xe0] sm:$0xff]  ;;  %v57_v42 = vld [vmem:[%s1593_s0 + $0xe8] sm:$0xff]  ;;  %v66_v45 = vpack.c.bf16 %v41_v38, %v40_v37 }
   0xc   :  { %1110 = vmatpush3.bf16.msra.mxu1 %v1213_v28  ;;  %v1216_v43 = vld [vmem:[%s1596_s3 + $0x18] sm:$0xff]   ;;  %v73_v46 = vpack.c.bf16 %v55_v40, %v54_v39  ;;  %v74_v47 = vpack.c.bf16 %v57_v42, %v56_v41  ;;  %v1217_v48 = vld [vmem:[%s1596_s3 + $0x20] sm:$0xff]  }
   0xd   :  { %1111 = vmatprep.subr.bf16.mxu1 %v1214_v30 }
  0x10   :  { %1112 = vmatpush3.bf16.msra.mxu1 %v1214_v30 }
  0x11   :  { %1113 = vmatprep.subr.bf16.mxu1 %v1215_v36 }
  0x12   :  { %1082 = vmatmul.mubr.msk.bf16.gmra.mrb[4].mxu0 %vm99_vm0, %v63_v29  ;;  %1098 = vmatmul.mubr.msk.bf16.gmra.mrb[4].mxu1 %vm99_vm0, %v71_v32 }
  0x13   :  { %1085 = vmatprep.mubr.msk.bf16.mxu0 %vm99_vm0, %v64_v31  ;;  %1101 = vmatprep.mubr.msk.bf16.mxu1 %vm99_vm0, %v72_v33 }
  0x14   :  { %1114 = vmatpush3.bf16.msra.mxu1 %v1215_v36 }
  0x15   :  { %1115 = vmatprep.subr.bf16.mxu1 %v1216_v43 }
  0x16   :  { %12 = vsyncpa [#allocation3], 0  ;;  %v42_v49 = vld [vmem:[%s1593_s0 + $0x70] sm:$0xff]  ;;  %v43_v50 = vld [vmem:[%s1593_s0 + $0x78] sm:$0xff] }
  0x17   :  { %v58_v51 = vld [vmem:[%s1593_s0 + $0xf0] sm:$0xff]  ;;  %v59_v52 = vld [vmem:[%s1593_s0 + $0xf8] sm:$0xff]  ;;  %v1218_v53 = vld [vmem:[%s1596_s3 + $0x28] sm:$0xff]   ;;  %v67_v54 = vpack.c.bf16 %v43_v50, %v42_v49 }
  0x18   :  { %1116 = vmatpush3.bf16.msra.mxu1 %v1216_v43  ;;  %v75_v55 = vpack.c.bf16 %v59_v52, %v58_v51  ;;  %v1219_v56 = vld [vmem:[%s1596_s3 + $0x30] sm:$0xff]   ;;  %v1220_v57 = vld [vmem:[%s1596_s3 + $0x38] sm:$0xff]   ;;  %v1221_v58 = vld [vmem:[%s1598_s5] sm:$0xff]  }
  0x19   :  { %1117 = vmatprep.subr.bf16.mxu1 %v1217_v48  ;;  %v1222_v59 = vld [vmem:[%s1598_s5 + $0x8] sm:$0xff]   ;;  %1157 = vmatprep.subr.bf16.mxu0 %v1221_v58  ;;  %v1223_v60 = vld [vmem:[%s1598_s5 + $0x10] sm:$0xff]   ;;  %v1224_v61 = vld [vmem:[%s1598_s5 + $0x18] sm:$0xff]  }
  0x1a   :  { %1086 = vmatmul.mubr.msk.bf16.gmra.mrb[8].mxu0 %vm99_vm0, %v65_v44  ;;  %1102 = vmatmul.mubr.msk.bf16.gmra.mrb[8].mxu1 %vm99_vm0, %v73_v46  ;;  %v1225_v62 = vld [vmem:[%s1598_s5 + $0x20] sm:$0xff]   ;;  %v1226_v63 = vld [vmem:[%s1598_s5 + $0x28] sm:$0xff]  }
  0x1b   :  { %1089 = vmatprep.mubr.msk.bf16.mxu0 %vm99_vm0, %v66_v45  ;;  %1105 = vmatprep.mubr.msk.bf16.mxu1 %vm99_vm0, %v74_v47  ;;  %v1458_v0 = vld [vmem:[%s1595_s2] ss:$0 sm:$0xff] }
  0x1c   :  { %1118 = vmatpush3.bf16.msra.mxu1 %v1217_v48  ;;  %1158 = vmatpush3.bf16.msra.mxu0 %v1221_v58 }
  0x1d   :  { %1119 = vmatprep.subr.bf16.mxu1 %v1218_v53  ;;  %1159 = vmatprep.subr.bf16.mxu0 %v1222_v59 }
  0x20   :  { %1120 = vmatpush3.bf16.msra.mxu1 %v1218_v53  ;;  %1160 = vmatpush3.bf16.msra.mxu0 %v1222_v59 }
  0x21   :  { %1121 = vmatprep.subr.bf16.mxu1 %v1219_v56  ;;  %1161 = vmatprep.subr.bf16.mxu0 %v1223_v60 }
  0x22   :  { %1090 = vmatmul.mubr.msk.bf16.gmra.mrb[12].mxu0 %vm99_vm0, %v67_v54  ;;  %1106 = vmatmul.mubr.msk.bf16.gmra.mrb[12].mxu1 %vm99_vm0, %v75_v55 }
  0x24   :  { %1122 = vmatpush3.bf16.msra.mxu1 %v1219_v56  ;;  %1162 = vmatpush3.bf16.msra.mxu0 %v1223_v60 }
  0x25   :  { %1123 = vmatprep.subr.bf16.mxu1 %v1220_v57  ;;  %1163 = vmatprep.subr.bf16.mxu0 %v1224_v61 }
  0x28   :  { %1124 = vmatpush3.bf16.msra.mxu1 %v1220_v57  ;;  %1164 = vmatpush3.bf16.msra.mxu0 %v1224_v61 }
  0x29   :  { %1165 = vmatprep.subr.bf16.mxu0 %v1225_v62 }
  0x2c   :  { %1166 = vmatpush3.bf16.msra.mxu0 %v1225_v62 }
  0x2d   :  { %1167 = vmatprep.subr.bf16.mxu0 %v1226_v63 }
  0x30   :  { %1168 = vmatpush3.bf16.msra.mxu0 %v1226_v63 }
  0xdd   :  { %v1079_v1 = vpop.f32.mrb[0].mxu0  ;;  %v1095_v4 = vpop.f32.mrb[0].mxu1 }
  0xde   :  { %v191_v2 = vadd.f32 %v1079_v1, %v1458_v0  ;;  %v182_v3 = vpop.f32.mrb[1].mxu0  ;;  %v255_v7 = vadd.f32 %v1095_v4, %v1458_v0  ;;  %v246_v8 = vpop.f32.mrb[1].mxu1 }
  0xdf   :  { %v183_v5 = vadd.f32 %v1458_v0, %v182_v3  ;;  %v1080_v6 = vpop.f32.mrb[2].mxu0  ;;  %v247_v11 = vadd.f32 %v1458_v0, %v246_v8  ;;  %v1096_v12 = vpop.f32.mrb[2].mxu1 }
  0xe0   :  { %v194_v9 = vadd.f32 %v1080_v6, %v1458_v0  ;;  %v185_v10 = vpop.f32.mrb[3].mxu0  ;;  %v327_v14 = vmax.f32 %v255_v7, 0.0  ;;  %v258_v15 = vadd.f32 %v1096_v12, %v1458_v0  ;;  %v249_v16 = vpop.f32.mrb[3].mxu1  ;;  %v311_v17 = vmax.f32 %v191_v2, 0.0 }
  0xe1   :  { %v186_v13 = vadd.f32 %v1458_v0, %v185_v10  ;;  %v325_v19 = vmax.f32 %v247_v11, 0.0  ;;  %v250_v20 = vadd.f32 %v1458_v0, %v249_v16  ;;  %v309_v21 = vmax.f32 %v183_v5, 0.0 }
  0xe2   :  { %v312_v18 = vmax.f32 %v194_v9, 0.0  ;;  %v328_v23 = vmax.f32 %v258_v15, 0.0 }
  0xe3   :  { %v310_v22 = vmax.f32 %v186_v13, 0.0  ;;  %v326_v25 = vmax.f32 %v250_v20, 0.0 }
  0xe4   :  { %v342_v24 = vpack.c.bf16 %v312_v18, %v311_v17  ;;  %v1468_v28 = vpack.c.bf16 %v328_v23, %v327_v14 }
  0xe5   :  { %v341_v26 = vpack.c.bf16 %v310_v22, %v309_v21  ;;  %v1083_v27 = vpop.f32.mrb[4].mxu0  ;;  %v1471_v31 = vpack.c.bf16 %v326_v25, %v325_v19  ;;  %v1099_v32 = vpop.f32.mrb[4].mxu1 }
  0xe6   :  { %v207_v29 = vadd.f32 %v1083_v27, %v1458_v0  ;;  %v198_v30 = vpop.f32.mrb[5].mxu0  ;;  %v271_v35 = vadd.f32 %v1099_v32, %v1458_v0  ;;  %v262_v36 = vpop.f32.mrb[5].mxu1 }
  0xe7   :  { %v199_v33 = vadd.f32 %v1458_v0, %v198_v30  ;;  %v1084_v34 = vpop.f32.mrb[6].mxu0  ;;  %1125 = vmatprep.mubr.bf16.mxu1 %v341_v26  ;;  %v263_v39 = vadd.f32 %v1458_v0, %v262_v36  ;;  %v1100_v40 = vpop.f32.mrb[6].mxu1 }
  0xe8   :  { %v210_v37 = vadd.f32 %v1084_v34, %v1458_v0  ;;  %v201_v38 = vpop.f32.mrb[7].mxu0  ;;  %1126 = vmatmul.mubr.bf16.vlgmr.msra.gmra.mrb[16].mxu1 %v342_v24  ;;  %v331_v42 = vmax.f32 %v271_v35, 0.0  ;;  %v274_v43 = vadd.f32 %v1100_v40, %v1458_v0  ;;  %v265_v44 = vpop.f32.mrb[7].mxu1  ;;  %v315_v45 = vmax.f32 %v207_v29, 0.0 }
  0xe9   :  { %v202_v41 = vadd.f32 %v1458_v0, %v201_v38  ;;  %v329_v47 = vmax.f32 %v263_v39, 0.0  ;;  %v266_v48 = vadd.f32 %v1458_v0, %v265_v44  ;;  %v313_v49 = vmax.f32 %v199_v33, 0.0 }
  0xea   :  { %v316_v46 = vmax.f32 %v210_v37, 0.0  ;;  %v332_v51 = vmax.f32 %v274_v43, 0.0 }
  0xeb   :  { %v314_v50 = vmax.f32 %v202_v41, 0.0  ;;  %v330_v53 = vmax.f32 %v266_v48, 0.0 }
  0xec   :  { %v344_v52 = vpack.c.bf16 %v316_v46, %v315_v45  ;;  %v1480_v56 = vpack.c.bf16 %v332_v51, %v331_v42 }
  0xed   :  { %v343_v54 = vpack.c.bf16 %v314_v50, %v313_v49  ;;  %v1087_v55 = vpop.f32.mrb[8].mxu0  ;;  %v351_v59 = vpack.c.bf16 %v330_v53, %v329_v47  ;;  %v1103_v60 = vpop.f32.mrb[8].mxu1 }
  0xee   :  { %v223_v57 = vadd.f32 %v1087_v55, %v1458_v0  ;;  %v214_v58 = vpop.f32.mrb[9].mxu0  ;;  %v287_v63 = vadd.f32 %v1103_v60, %v1458_v0  ;;  %v278_v1 = vpop.f32.mrb[9].mxu1 }
  0xef   :  { %v215_v61 = vadd.f32 %v1458_v0, %v214_v58  ;;  %v1088_v62 = vpop.f32.mrb[10].mxu0  ;;  %1129 = vmatprep.mubr.bf16.mxu1 %v343_v54  ;;  %v279_v4 = vadd.f32 %v1458_v0, %v278_v1  ;;  %v1104_v5 = vpop.f32.mrb[10].mxu1 }
  0xf0   :  { %v226_v2 = vadd.f32 %v1088_v62, %v1458_v0  ;;  %v217_v3 = vpop.f32.mrb[11].mxu0  ;;  %1130 = vmatmul.mubr.bf16.gmra.mrb[20].mxu1 %v344_v52  ;;  %v335_v7 = vmax.f32 %v287_v63, 0.0  ;;  %v290_v8 = vadd.f32 %v1104_v5, %v1458_v0  ;;  %v281_v9 = vpop.f32.mrb[11].mxu1  ;;  %v319_v10 = vmax.f32 %v223_v57, 0.0  ;;  %v1228_v52 = vld [vmem:[%s1598_s5 + $0x38] sm:$0xff]  }
  0xf1   :  { %v218_v6 = vadd.f32 %v1458_v0, %v217_v3  ;;  %v333_v12 = vmax.f32 %v279_v4, 0.0  ;;  %v282_v13 = vadd.f32 %v1458_v0, %v281_v9  ;;  %v317_v14 = vmax.f32 %v215_v61, 0.0 }
  0xf2   :  { %v320_v11 = vmax.f32 %v226_v2, 0.0  ;;  %v336_v16 = vmax.f32 %v290_v8, 0.0 }
  0xf3   :  { %v318_v15 = vmax.f32 %v218_v6, 0.0  ;;  %v334_v18 = vmax.f32 %v282_v13, 0.0 }
  0xf4   :  { %v346_v17 = vpack.c.bf16 %v320_v11, %v319_v10  ;;  %v354_v21 = vpack.c.bf16 %v336_v16, %v335_v7 }
  0xf5   :  { %v345_v19 = vpack.c.bf16 %v318_v15, %v317_v14  ;;  %v1091_v20 = vpop.f32.mrb[12].mxu0  ;;  %v353_v24 = vpack.c.bf16 %v334_v18, %v333_v12  ;;  %v1107_v25 = vpop.f32.mrb[12].mxu1 }
  0xf6   :  { %v239_v22 = vadd.f32 %v1091_v20, %v1458_v0  ;;  %v230_v23 = vpop.f32.mrb[13].mxu0  ;;  %v303_v29 = vadd.f32 %v1107_v25, %v1458_v0  ;;  %v294_v30 = vpop.f32.mrb[13].mxu1 }
  0xf7   :  { %v231_v26 = vadd.f32 %v1458_v0, %v230_v23  ;;  %v1092_v27 = vpop.f32.mrb[14].mxu0  ;;  %1133 = vmatprep.mubr.bf16.mxu1 %v345_v19  ;;  %v295_v34 = vadd.f32 %v1458_v0, %v294_v30  ;;  %v1108_v35 = vpop.f32.mrb[14].mxu1 }
  0xf8   :  { %v242_v32 = vadd.f32 %v1092_v27, %v1458_v0  ;;  %v233_v33 = vpop.f32.mrb[15].mxu0  ;;  %1134 = vmatmul.mubr.bf16.gmra.mrb[24].mxu1 %v346_v17  ;;  %v339_v37 = vmax.f32 %v303_v29, 0.0  ;;  %v306_v38 = vadd.f32 %v1108_v35, %v1458_v0  ;;  %v297_v39 = vpop.f32.mrb[15].mxu1  ;;  %v323_v40 = vmax.f32 %v239_v22, 0.0 }
  0xf9   :  { %v234_v36 = vadd.f32 %v1458_v0, %v233_v33  ;;  %v337_v42 = vmax.f32 %v295_v34, 0.0  ;;  %v298_v43 = vadd.f32 %v1458_v0, %v297_v39  ;;  %v321_v44 = vmax.f32 %v231_v26, 0.0  ;;  %v1227_v0 = vld [vmem:[%s1598_s5 + $0x30] sm:$0xff]  }
  0xfa   :  { %v324_v41 = vmax.f32 %v242_v32, 0.0  ;;  %v340_v46 = vmax.f32 %v306_v38, 0.0  ;;  %1169 = vmatprep.subr.bf16.mxu0 %v1227_v0 }
  0xfb   :  { %v322_v45 = vmax.f32 %v234_v36, 0.0  ;;  %v338_v48 = vmax.f32 %v298_v43, 0.0  ;;  %1170 = vmatpush3.bf16.msra.mxu0 %v1227_v0 }
  0xfc   :  { %v348_v47 = vpack.c.bf16 %v324_v41, %v323_v40  ;;  %v356_v50 = vpack.c.bf16 %v340_v46, %v339_v37  ;;  %1171 = vmatprep.subr.bf16.mxu0 %v1228_v52 }
  0xfd   :  { %v347_v49 = vpack.c.bf16 %v322_v45, %v321_v44  ;;  %v355_v51 = vpack.c.bf16 %v338_v48, %v337_v42 }
  0xff   :  { %1137 = vmatprep.mubr.bf16.mxu1 %v347_v49  ;;  %1172 = vmatpush3.bf16.msra.mxu0 %v1228_v52 }
 0x100   :  { %1138 = vmatmul.mubr.bf16.gmra.mrb[28].mxu1 %v348_v47 }
 0x101   :  { %1141 = vmatprep.mubr.bf16.mxu1 %v1471_v31 }
 0x108   :  { %1142 = vmatmul.mubr.bf16.gmra.mrb[32].mxu1 %v1468_v28  ;;  %v1510_v28 = vld [vmem:[%s1597_s4] ss:$0 sm:$0xff] }
 0x109   :  { %1145 = vmatprep.mubr.bf16.mxu1 %v351_v59 }
 0x110   :  { %1146 = vmatmul.mubr.bf16.gmra.mrb[36].mxu1 %v1480_v56 }
 0x111   :  { %1149 = vmatprep.mubr.bf16.mxu1 %v353_v24 }
 0x118   :  { %1150 = vmatmul.mubr.bf16.gmra.mrb[40].mxu1 %v354_v21 }
 0x119   :  { %1153 = vmatprep.mubr.bf16.mxu1 %v355_v51 }
 0x120   :  { %1154 = vmatmul.mubr.bf16.gmra.mrb[44].mxu1 %v356_v50 }
 0x1bb   :  { %v1127_v31 = vpop.f32.mrb[16].mxu1 }
 0x1bc   :  { %v471_v53 = vadd.f32 %v1127_v31, %v1510_v28  ;;  %v462_v54 = vpop.f32.mrb[17].mxu1 }
 0x1bd   :  { %v463_v55 = vadd.f32 %v1510_v28, %v462_v54  ;;  %v1128_v56 = vpop.f32.mrb[18].mxu1 }
 0x1be   :  { %v474_v57 = vadd.f32 %v1128_v56, %v1510_v28  ;;  %v465_v58 = vpop.f32.mrb[19].mxu1  ;;  %v591_v60 = vmax.f32 %v471_v53, 0.0 }
 0x1bf   :  { %v466_v59 = vadd.f32 %v1510_v28, %v465_v58  ;;  %v589_v62 = vmax.f32 %v463_v55, 0.0 }
 0x1c0   :  { %v592_v61 = vmax.f32 %v474_v57, 0.0 }
 0x1c1   :  { %v590_v63 = vmax.f32 %v466_v59, 0.0 }
 0x1c2   :  { %v622_v1 = vpack.c.bf16 %v592_v61, %v591_v60 }
 0x1c3   :  { %v621_v2 = vpack.c.bf16 %v590_v63, %v589_v62  ;;  %v1131_v3 = vpop.f32.mrb[20].mxu1 }
 0x1c4   :  { %v487_v4 = vadd.f32 %v1131_v3, %v1510_v28  ;;  %v478_v5 = vpop.f32.mrb[21].mxu1 }
 0x1c5   :  { %v479_v6 = vadd.f32 %v1510_v28, %v478_v5  ;;  %v1132_v7 = vpop.f32.mrb[22].mxu1  ;;  %1173 = vmatprep.mubr.bf16.mxu0 %v621_v2 }
 0x1c6   :  { %v490_v8 = vadd.f32 %v1132_v7, %v1510_v28  ;;  %v481_v9 = vpop.f32.mrb[23].mxu1  ;;  %1174 = vmatmul.mubr.bf16.vlgmr.msra.gmra.mrb[16].mxu0 %v622_v1  ;;  %v595_v11 = vmax.f32 %v487_v4, 0.0 }
 0x1c7   :  { %v482_v10 = vadd.f32 %v1510_v28, %v481_v9  ;;  %v593_v13 = vmax.f32 %v479_v6, 0.0 }
 0x1c8   :  { %v596_v12 = vmax.f32 %v490_v8, 0.0 }
 0x1c9   :  { %v594_v14 = vmax.f32 %v482_v10, 0.0 }
 0x1ca   :  { %v624_v15 = vpack.c.bf16 %v596_v12, %v595_v11 }
 0x1cb   :  { %v623_v16 = vpack.c.bf16 %v594_v14, %v593_v13  ;;  %v1135_v17 = vpop.f32.mrb[24].mxu1 }
 0x1cc   :  { %v503_v18 = vadd.f32 %v1135_v17, %v1510_v28  ;;  %v494_v19 = vpop.f32.mrb[25].mxu1 }
 0x1cd   :  { %v495_v20 = vadd.f32 %v1510_v28, %v494_v19  ;;  %v1136_v21 = vpop.f32.mrb[26].mxu1  ;;  %1177 = vmatprep.mubr.bf16.mxu0 %v623_v16 }
 0x1ce   :  { %v506_v22 = vadd.f32 %v1136_v21, %v1510_v28  ;;  %v497_v23 = vpop.f32.mrb[27].mxu1  ;;  %1178 = vmatmul.mubr.bf16.gmra.mrb[20].mxu0 %v624_v15  ;;  %v599_v25 = vmax.f32 %v503_v18, 0.0 }
 0x1cf   :  { %v498_v24 = vadd.f32 %v1510_v28, %v497_v23  ;;  %v597_v27 = vmax.f32 %v495_v20, 0.0 }
 0x1d0   :  { %v600_v26 = vmax.f32 %v506_v22, 0.0 }
 0x1d1   :  { %v598_v29 = vmax.f32 %v498_v24, 0.0 }
 0x1d2   :  { %v626_v30 = vpack.c.bf16 %v600_v26, %v599_v25 }
 0x1d3   :  { %v625_v32 = vpack.c.bf16 %v598_v29, %v597_v27  ;;  %v1139_v33 = vpop.f32.mrb[28].mxu1 }
 0x1d4   :  { %v519_v34 = vadd.f32 %v1139_v33, %v1510_v28  ;;  %v510_v35 = vpop.f32.mrb[29].mxu1 }
 0x1d5   :  { %v511_v36 = vadd.f32 %v1510_v28, %v510_v35  ;;  %v1140_v37 = vpop.f32.mrb[30].mxu1  ;;  %1181 = vmatprep.mubr.bf16.mxu0 %v625_v32 }
 0x1d6   :  { %v522_v38 = vadd.f32 %v1140_v37, %v1510_v28  ;;  %v513_v39 = vpop.f32.mrb[31].mxu1  ;;  %1182 = vmatmul.mubr.bf16.gmra.mrb[24].mxu0 %v626_v30  ;;  %v603_v41 = vmax.f32 %v519_v34, 0.0 }
 0x1d7   :  { %v514_v40 = vadd.f32 %v1510_v28, %v513_v39  ;;  %v601_v43 = vmax.f32 %v511_v36, 0.0 }
 0x1d8   :  { %v604_v42 = vmax.f32 %v522_v38, 0.0 }
 0x1d9   :  { %v602_v44 = vmax.f32 %v514_v40, 0.0  ;;  %v1547_v40 = vld [vmem:[%s1599_s6] ss:$0 sm:$0xff]  ;;  %s1254_s6 = smov [#allocation2]  }
 0x1da   :  { %v628_v45 = vpack.c.bf16 %v604_v42, %v603_v41  ;;  %s962_s29 = sshll.u32 %s1254_s6, 4  ;;  %s963_s29 = int_to_ptr.vmem [resolvable:$true] %s962_s29 }
 0x1db   :  { %v627_v46 = vpack.c.bf16 %v602_v44, %v601_v43  ;;  %v1143_v47 = vpop.f32.mrb[32].mxu1  ;;  %s1229_s30 = scalar_lea.vmem %s963_s29, 32  ;;  %p1234_p1 = scmp.lt.s32.totalorder %s963_s29, %s963_s29 }
 0x1dc   :  { %v535_v48 = vadd.f32 %v1143_v47, %v1510_v28  ;;  %v526_v49 = vpop.f32.mrb[33].mxu1  ;;  %p1230_p0 = scmp.ne.s32.totalorder %s963_s29, %s1229_s30  ;;  %p1235_p2 = scmp.lt.s32.totalorder %s1229_s30, %s1229_s30 }
 0x1dd   :  { %v527_v50 = vadd.f32 %v1510_v28, %v526_v49  ;;  %v1144_v51 = vpop.f32.mrb[34].mxu1  ;;  %1185 = vmatprep.mubr.bf16.mxu0 %v627_v46 }
 0x1de   :  { %v538_v0 = vadd.f32 %v1144_v51, %v1510_v28  ;;  %v529_v52 = vpop.f32.mrb[35].mxu1  ;;  %1186 = vmatmul.mubr.bf16.gmra.mrb[28].mxu0 %v628_v45  ;;  %v607_v53 = vmax.f32 %v535_v48, 0.0  ;;  %p1236_p3 = por %p1235_p2, %p1234_p1 }
 0x1df   :  { %v530_v31 = vadd.f32 %v1510_v28, %v529_v52  ;;  %v605_v55 = vmax.f32 %v527_v50, 0.0 }
 0x1e0   :  { %v608_v54 = vmax.f32 %v538_v0, 0.0  ;;  %p1237_p4 = pnand %p1236_p3, %p1230_p0 }
 0x1e1   :  { %v606_v56 = vmax.f32 %v530_v31, 0.0 }
 0x1e2   :  { %v630_v57 = vpack.c.bf16 %v608_v54, %v607_v53 }
 0x1e3   :  { %v629_v58 = vpack.c.bf16 %v606_v56, %v605_v55  ;;  %v1147_v59 = vpop.f32.mrb[36].mxu1 }
 0x1e4   :  { %v551_v60 = vadd.f32 %v1147_v59, %v1510_v28  ;;  %v542_v61 = vpop.f32.mrb[37].mxu1 }
 0x1e5   :  { %v543_v62 = vadd.f32 %v1510_v28, %v542_v61  ;;  %v1148_v63 = vpop.f32.mrb[38].mxu1  ;;  %1189 = vmatprep.mubr.bf16.mxu0 %v629_v58 }
 0x1e6   :  { %v611_v1 = vmax.f32 %v551_v60, 0.0  ;;  %v554_v2 = vadd.f32 %v1148_v63, %v1510_v28  ;;  %v545_v3 = vpop.f32.mrb[39].mxu1  ;;  %1190 = vmatmul.mubr.bf16.gmra.mrb[32].mxu0 %v630_v57 }
 0x1e7   :  { %v609_v4 = vmax.f32 %v543_v62, 0.0  ;;  %v546_v5 = vadd.f32 %v1510_v28, %v545_v3 }
 0x1e8   :  { %v612_v6 = vmax.f32 %v554_v2, 0.0 }
 0x1e9   :  { %v610_v7 = vmax.f32 %v546_v5, 0.0 }
 0x1ea   :  { %v632_v8 = vpack.c.bf16 %v612_v6, %v611_v1 }
 0x1eb   :  { %v631_v9 = vpack.c.bf16 %v610_v7, %v609_v4  ;;  %v1151_v10 = vpop.f32.mrb[40].mxu1 }
 0x1ec   :  { %v567_v11 = vadd.f32 %v1151_v10, %v1510_v28  ;;  %v558_v12 = vpop.f32.mrb[41].mxu1 }
 0x1ed   :  { %1193 = vmatprep.mubr.bf16.mxu0 %v631_v9  ;;  %v559_v13 = vadd.f32 %v1510_v28, %v558_v12  ;;  %v1152_v14 = vpop.f32.mrb[42].mxu1 }
 0x1ee   :  { %1194 = vmatmul.mubr.bf16.gmra.mrb[36].mxu0 %v632_v8  ;;  %v615_v15 = vmax.f32 %v567_v11, 0.0  ;;  %v570_v16 = vadd.f32 %v1152_v14, %v1510_v28  ;;  %v561_v17 = vpop.f32.mrb[43].mxu1 }
 0x1ef   :  { %v613_v18 = vmax.f32 %v559_v13, 0.0  ;;  %v562_v19 = vadd.f32 %v1510_v28, %v561_v17 }
 0x1f0   :  { %v616_v20 = vmax.f32 %v570_v16, 0.0 }
 0x1f1   :  { %v614_v21 = vmax.f32 %v562_v19, 0.0 }
 0x1f2   :  { %v634_v22 = vpack.c.bf16 %v616_v20, %v615_v15 }
 0x1f3   :  { %v633_v23 = vpack.c.bf16 %v614_v21, %v613_v18  ;;  %v1155_v24 = vpop.f32.mrb[44].mxu1 }
 0x1f4   :  { %v583_v25 = vadd.f32 %v1155_v24, %v1510_v28  ;;  %v574_v26 = vpop.f32.mrb[45].mxu1 }
 0x1f5   :  { %1197 = vmatprep.mubr.bf16.mxu0 %v633_v23  ;;  %v575_v27 = vadd.f32 %v1510_v28, %v574_v26  ;;  %v1156_v29 = vpop.f32.mrb[46].mxu1 }
 0x1f6   :  { %1198 = vmatmul.mubr.bf16.gmra.mrb[40].mxu0 %v634_v22  ;;  %v619_v30 = vmax.f32 %v583_v25, 0.0  ;;  %v586_v32 = vadd.f32 %v1156_v29, %v1510_v28  ;;  %v577_v33 = vpop.f32.mrb[47].mxu1 }
 0x1f7   :  { %v617_v34 = vmax.f32 %v575_v27, 0.0  ;;  %v578_v35 = vadd.f32 %v1510_v28, %v577_v33 }
 0x1f8   :  { %v620_v36 = vmax.f32 %v586_v32, 0.0 }
 0x1f9   :  { %v618_v37 = vmax.f32 %v578_v35, 0.0 }
 0x1fa   :  { %v636_v38 = vpack.c.bf16 %v620_v36, %v619_v30 }
 0x1fb   :  { %v635_v39 = vpack.c.bf16 %v618_v37, %v617_v34 }
 0x1fd   :  { %1201 = vmatprep.mubr.bf16.mxu0 %v635_v39 }
 0x1fe   :  { %1202 = vmatmul.mubr.bf16.gmra.mrb[44].mxu0 %v636_v38 }
 0x299   :  { %v1175_v41 = vpop.f32.mrb[16].mxu0 }
 0x29a   :  { %v742_v42 = vpop.f32.mrb[17].mxu0  ;;  %v751_v48 = vadd.f32 %v1175_v41, %v1547_v40 }
 0x29b   :  { %v1176_v43 = vpop.f32.mrb[18].mxu0  ;;  %v743_v44 = vadd.f32 %v1547_v40, %v742_v42  ;;  %v1253_v42 = vmov 1966171168  }
 0x29c   :  { %v745_v45 = vpop.f32.mrb[19].mxu0  ;;  %v754_v51 = vadd.f32 %v1176_v43, %v1547_v40  ;;  %v937_v43 = vunpack.c.l.s4 %v1253_v42 }
 0x29d   :  { %869 = vxpose.xlu0.b32.start [1/16] (narrow) %v743_v44, 8  ;;  %v746_v28 = vadd.f32 %v1547_v40, %v745_v45  ;;  %v939_v44 = vlaneseq }
 0x29e   :  { %v938_v45 = vunpack.c.0.s8 %v937_v43 }
 0x29f   :  { %vm953_vm1 = vcmp.lt.s32.totalorder %v939_v44, 256 }
 0x2a1   :  { %v1179_v46 = vpop.f32.mrb[20].mxu0  ;;  %870 = vxpose.xlu0.b32.cont [2/16] (narrow) %v746_v28, 8  ;;  %v940_v28 = vshrl.u32 %v939_v44, 7 }
 0x2a2   :  { %v758_v47 = vpop.f32.mrb[21].mxu0  ;;  %v767_v58 = vadd.f32 %v1179_v46, %v1547_v40 }
 0x2a3   :  { %v1180_v49 = vpop.f32.mrb[22].mxu0  ;;  %v759_v31 = vadd.f32 %v1547_v40, %v758_v47  ;;  %v941_v47 = vsub.s32 %v938_v45, %v940_v28 }
 0x2a4   :  { %v761_v50 = vpop.f32.mrb[23].mxu0  ;;  %v770_v61 = vadd.f32 %v1180_v49, %v1547_v40 }
 0x2a5   :  { %871 = vxpose.xlu0.b32.cont [3/16] (narrow) %v751_v48, 8  ;;  %v762_v55 = vadd.f32 %v1547_v40, %v761_v50 }
 0x2a9   :  { %v1183_v0 = vpop.f32.mrb[24].mxu0  ;;  %872 = vxpose.xlu0.b32.cont [4/16] (narrow) %v754_v51, 8 }
 0x2aa   :  { %v774_v52 = vpop.f32.mrb[25].mxu0  ;;  %v783_v9 = vadd.f32 %v1183_v0, %v1547_v40 }
 0x2ab   :  { %v1184_v53 = vpop.f32.mrb[26].mxu0  ;;  %v775_v1 = vadd.f32 %v1547_v40, %v774_v52 }
 0x2ac   :  { %v777_v54 = vpop.f32.mrb[27].mxu0  ;;  %v786_v13 = vadd.f32 %v1184_v53, %v1547_v40 }
 0x2ad   :  { %873 = vxpose.xlu0.b32.cont [5/16] (narrow) %v759_v31, 8  ;;  %v778_v5 = vadd.f32 %v1547_v40, %v777_v54 }
 0x2b1   :  { %v1187_v56 = vpop.f32.mrb[28].mxu0  ;;  %874 = vxpose.xlu0.b32.cont [6/16] (narrow) %v762_v55, 8 }
 0x2b2   :  { %v790_v57 = vpop.f32.mrb[29].mxu0  ;;  %v799_v32 = vadd.f32 %v1187_v56, %v1547_v40 }
 0x2b3   :  { %v1188_v59 = vpop.f32.mrb[30].mxu0  ;;  %v791_v18 = vadd.f32 %v1547_v40, %v790_v57 }
 0x2b4   :  { %v793_v60 = vpop.f32.mrb[31].mxu0  ;;  %v802_v39 = vadd.f32 %v1188_v59, %v1547_v40 }
 0x2b5   :  { %875 = vxpose.xlu0.b32.cont [7/16] (narrow) %v767_v58, 8  ;;  %v794_v25 = vadd.f32 %v1547_v40, %v793_v60 }
 0x2b9   :  { %v1191_v62 = vpop.f32.mrb[32].mxu0  ;;  %876 = vxpose.xlu0.b32.cont [8/16] (narrow) %v770_v61, 8 }
 0x2ba   :  { %v806_v63 = vpop.f32.mrb[33].mxu0  ;;  %v815_v10 = vadd.f32 %v1191_v62, %v1547_v40 }
 0x2bb   :  { %v1192_v2 = vpop.f32.mrb[34].mxu0  ;;  %v807_v3 = vadd.f32 %v1547_v40, %v806_v63 }
 0x2bc   :  { %v809_v4 = vpop.f32.mrb[35].mxu0  ;;  %v818_v14 = vadd.f32 %v1192_v2, %v1547_v40 }
 0x2bd   :  { %901 = vxpose.xlu1.b32.start [1/16] (narrow) %v807_v3, 8  ;;  %877 = vxpose.xlu0.b32.cont [9/16] (narrow) %v775_v1, 8  ;;  %v810_v6 = vadd.f32 %v1547_v40, %v809_v4 }
 0x2c1   :  { %v1195_v7 = vpop.f32.mrb[36].mxu0  ;;  %902 = vxpose.xlu1.b32.cont [2/16] (narrow) %v810_v6, 8  ;;  %878 = vxpose.xlu0.b32.cont [10/16] (narrow) %v778_v5, 8 }
 0x2c2   :  { %v822_v8 = vpop.f32.mrb[37].mxu0  ;;  %v831_v33 = vadd.f32 %v1195_v7, %v1547_v40 }
 0x2c3   :  { %v1196_v11 = vpop.f32.mrb[38].mxu0  ;;  %v823_v19 = vadd.f32 %v1547_v40, %v822_v8 }
 0x2c4   :  { %v825_v12 = vpop.f32.mrb[39].mxu0  ;;  %v834_v41 = vadd.f32 %v1196_v11, %v1547_v40 }
 0x2c5   :  { %903 = vxpose.xlu1.b32.cont [3/16] (narrow) %v815_v10, 8  ;;  %879 = vxpose.xlu0.b32.cont [11/16] (narrow) %v783_v9, 8  ;;  %v826_v26 = vadd.f32 %v1547_v40, %v825_v12 }
 0x2c9   :  { %904 = vxpose.xlu1.b32.cont [4/16] (narrow) %v818_v14, 8  ;;  %880 = vxpose.xlu0.b32.cont [12/16] (narrow) %v786_v13, 8  ;;  %v1199_v15 = vpop.f32.mrb[40].mxu0 }
 0x2ca   :  { %v847_v16 = vadd.f32 %v1199_v15, %v1547_v40  ;;  %v838_v17 = vpop.f32.mrb[41].mxu0 }
 0x2cb   :  { %v839_v20 = vadd.f32 %v1547_v40, %v838_v17  ;;  %v1200_v21 = vpop.f32.mrb[42].mxu0 }
 0x2cc   :  { %v850_v22 = vadd.f32 %v1200_v21, %v1547_v40  ;;  %v841_v23 = vpop.f32.mrb[43].mxu0 }
 0x2cd   :  { %905 = vxpose.xlu1.b32.cont [5/16] (narrow) %v823_v19, 8  ;;  %881 = vxpose.xlu0.b32.cont [13/16] (narrow) %v791_v18, 8  ;;  %v842_v24 = vadd.f32 %v1547_v40, %v841_v23 }
 0x2d1   :  { %906 = vxpose.xlu1.b32.cont [6/16] (narrow) %v826_v26, 8  ;;  %882 = vxpose.xlu0.b32.cont [14/16] (narrow) %v794_v25, 8  ;;  %v1203_v27 = vpop.f32.mrb[44].mxu0 }
 0x2d2   :  { %v863_v29 = vadd.f32 %v1203_v27, %v1547_v40  ;;  %v854_v30 = vpop.f32.mrb[45].mxu0 }
 0x2d3   :  { %v855_v34 = vadd.f32 %v1547_v40, %v854_v30  ;;  %v1204_v35 = vpop.f32.mrb[46].mxu0 }
 0x2d4   :  { %v866_v36 = vadd.f32 %v1204_v35, %v1547_v40  ;;  %v857_v37 = vpop.f32.mrb[47].mxu0 }
 0x2d5   :  { %907 = vxpose.xlu1.b32.cont [7/16] (narrow) %v831_v33, 8  ;;  %883 = vxpose.xlu0.b32.cont [15/16] (narrow) %v799_v32, 8  ;;  %v858_v38 = vadd.f32 %v1547_v40, %v857_v37 }
 0x2d9   :  { %908 = vxpose.xlu1.b32.cont [8/16] (narrow) %v834_v41, 8  ;;  %884 = vxpose.xlu0.b32.end [16/16] (narrow) %v802_v39, 8 }
 0x2dd   :  { %909 = vxpose.xlu1.b32.cont [9/16] (narrow) %v839_v20, 8 }
 0x2e1   :  { %910 = vxpose.xlu1.b32.cont [10/16] (narrow) %v842_v24, 8 }
 0x2e5   :  { %911 = vxpose.xlu1.b32.cont [11/16] (narrow) %v847_v16, 8 }
 0x2e9   :  { %912 = vxpose.xlu1.b32.cont [12/16] (narrow) %v850_v22, 8 }
 0x2ed   :  { %913 = vxpose.xlu1.b32.cont [13/16] (narrow) %v855_v34, 8 }
 0x2f1   :  { %914 = vxpose.xlu1.b32.cont [14/16] (narrow) %v858_v38, 8 }
 0x2f5   :  { %915 = vxpose.xlu1.b32.cont [15/16] (narrow) %v863_v29, 8 }
 0x2f9   :  { %916 = vxpose.xlu1.b32.end [16/16] (narrow) %v866_v36, 8 }
 0x31d   :  { %v885_v46 = vpop.trf.xlu0 }
 0x33d   :  { %v917_v48 = vpop.trf.xlu1 }
 0x33e   :  { %v935_v49 = vcombine.low %v885_v46, %v917_v48 }
 0x340   :  { %v942_v40 = vrot.slane %v935_v49, %v941_v47 }
 0x342   :  { %v949_v50 = vrot.slane %v942_v40, %v941_v47 }
 0x344   :  { %955 = vst.msk [vmem:[#allocation2] sm:$0x3] %vm953_vm1, %v949_v50 }
 0x345   :  { %1240 = shalt.err (!%p1237_p4)
}
 0x346   :  { %s1241_s10 = scalar_lea.hbm %s1600_s7, 32 }
 0x347   :  { %p1242_p5 = scmp.ne.s32.totalorder %s1600_s7, %s1241_s10  ;;  %p1245_p6 = scmp.lt.u32.totalorder %s1241_s10, %s1600_s7 }
 0x349   :  { %p1247_p7 = pnand %p1245_p6, %p1242_p5 }
 0x34b   :  { %1250 = shalt.err (!%p1247_p7)
}
 0x34c   :  { %965 = dma.vmem_to_hbm [thread:$0]  %s963_s29, 32, %s1600_s7, [#allocation3]  }
 0x34d   :  { %1251 = dma.done.wait [#allocation3], 32  }
 0x34e   :  { %1252 = vsyncadd [#allocation3], 4294967264 }
 0x34f   :  { %969 = vsyncpa [#allocation3], 1 }

</bundles_post_ra>
